<compile_context>
chip_gen: v6e
topology: v6e:2x2x1
jax: 0.10.0
libtpu: 0.0.40
codegen_flags: <defaults>
</compile_context>

<pallas_src>
import functools
import math

import jax
import jax.numpy as jnp
from jax.experimental import pallas as pl
from jax.experimental.pallas import tpu as pltpu


# ----------------------------- tiling helpers ------------------------------

def _round_up(x, m):
    return (x + m - 1) // m * m


def _tile(dim, target):
    """Return (tile, padded_dim).  Full-dim block if dim <= target, otherwise
    target-sized tiles with dim padded up to a multiple of target."""
    if dim <= target:
        return dim, dim
    return target, _round_up(dim, target)


def _pad2(a, rows, cols):
    r, c = a.shape
    if r == rows and c == cols:
        return a
    return jnp.pad(a, ((0, rows - r), (0, cols - c)))


# ----------------------------- Pallas kernels ------------------------------

def _dense_kernel(x_ref, w_ref, b_ref, o_ref, acc_ref, *, activation):
    """acc += x @ w over the K grid axis; bias (+gelu) epilogue on the last K."""
    k = pl.program_id(2)

    @pl.when(k == 0)
    def _init():
        acc_ref[...] = jnp.zeros_like(acc_ref)

    acc_ref[...] += jnp.dot(x_ref[...], w_ref[...],
                            preferred_element_type=jnp.float32)

    @pl.when(k == pl.num_programs(2) - 1)
    def _finalize():
        y = acc_ref[...] + b_ref[...].astype(jnp.float32)
        if activation == "gelu":        # exact (erf) GELU, as in BERT
            y = 0.5 * y * (1.0 + jax.lax.erf(y * (1.0 / math.sqrt(2.0))))
        o_ref[...] = y.astype(o_ref.dtype)


def dense(x, w, b, activation=None, *, tm=256, tk=512, tn=512):
    """y = act(x @ w + b);  x:[M,K] bf16, w:[K,N] bf16, b:[1,N] f32 -> bf16."""
    M, K = x.shape
    N = w.shape[1]
    tm_, Mp = _tile(M, tm)
    tk_, Kp = _tile(K, tk)
    tn_, Np = _tile(N, tn)

    xp = _pad2(x, Mp, Kp)
    wp = _pad2(w, Kp, Np)
    bp = _pad2(b, 1, Np)

    out = pl.pallas_call(
        functools.partial(_dense_kernel, activation=activation),
        out_shape=jax.ShapeDtypeStruct((Mp, Np), jnp.bfloat16),
        grid=(Mp // tm_, Np // tn_, Kp // tk_),
        in_specs=[
            pl.BlockSpec((tm_, tk_), lambda i, j, k: (i, k)),
            pl.BlockSpec((tk_, tn_), lambda i, j, k: (k, j)),
            pl.BlockSpec((1, tn_), lambda i, j, k: (0, j)),
        ],
        out_specs=pl.BlockSpec((tm_, tn_), lambda i, j, k: (i, j)),
        scratch_shapes=[pltpu.VMEM((tm_, tn_), jnp.float32)],
        compiler_params=pltpu.CompilerParams(
            dimension_semantics=("parallel", "parallel", "arbitrary")),
    )(xp, wp, bp)
    return out[:M, :N]


def _dense_res_ln_kernel(x_ref, w_ref, b_ref, res_ref, g_ref, beta_ref,
                         o_ref, acc_ref, *, eps):
    """acc += x @ w; epilogue on last K: +bias, +residual, LayerNorm(gamma,beta)."""
    k = pl.program_id(1)

    @pl.when(k == 0)
    def _init():
        acc_ref[...] = jnp.zeros_like(acc_ref)

    acc_ref[...] += jnp.dot(x_ref[...], w_ref[...],
                            preferred_element_type=jnp.float32)

    @pl.when(k == pl.num_programs(1) - 1)
    def _finalize():
        y = (acc_ref[...] + b_ref[...].astype(jnp.float32)
             + res_ref[...].astype(jnp.float32))
        mu = jnp.mean(y, axis=-1, keepdims=True)
        var = jnp.mean(jnp.square(y - mu), axis=-1, keepdims=True)
        y = (y - mu) * jax.lax.rsqrt(var + eps)
        y = y * g_ref[...] + beta_ref[...]
        o_ref[...] = y.astype(o_ref.dtype)


def dense_add_ln(x, w, b, res, gamma, beta, eps=1e-12, *, tm=256, tk=512):
    """LayerNorm(x @ w + b + res); x:[M,K] w:[K,N] res:[M,N]; full-N blocks."""
    M, K = x.shape
    N = w.shape[1]
    tm_, Mp = _tile(M, tm)
    tk_, Kp = _tile(K, tk)

    xp = _pad2(x, Mp, Kp)
    wp = _pad2(w, Kp, N)
    resp = _pad2(res, Mp, N)

    out = pl.pallas_call(
        functools.partial(_dense_res_ln_kernel, eps=eps),
        out_shape=jax.ShapeDtypeStruct((Mp, N), jnp.bfloat16),
        grid=(Mp // tm_, Kp // tk_),
        in_specs=[
            pl.BlockSpec((tm_, tk_), lambda i, k: (i, k)),
            pl.BlockSpec((tk_, N), lambda i, k: (k, 0)),
            pl.BlockSpec((1, N), lambda i, k: (0, 0)),
            pl.BlockSpec((tm_, N), lambda i, k: (i, 0)),
            pl.BlockSpec((1, N), lambda i, k: (0, 0)),
            pl.BlockSpec((1, N), lambda i, k: (0, 0)),
        ],
        out_specs=pl.BlockSpec((tm_, N), lambda i, k: (i, 0)),
        scratch_shapes=[pltpu.VMEM((tm_, N), jnp.float32)],
        compiler_params=pltpu.CompilerParams(
            dimension_semantics=("parallel", "arbitrary")),
    )(xp, wp, b, resp, gamma, beta)
    return out[:M]


def _ln_kernel(x_ref, g_ref, b_ref, o_ref, *, eps):
    x = x_ref[...].astype(jnp.float32)
    mu = jnp.mean(x, axis=-1, keepdims=True)
    var = jnp.mean(jnp.square(x - mu), axis=-1, keepdims=True)
    y = (x - mu) * jax.lax.rsqrt(var + eps)
    o_ref[...] = (y * g_ref[...] + b_ref[...]).astype(o_ref.dtype)


def layernorm(x, gamma, beta, eps=1e-12, *, tm=256):
    """LayerNorm over the last axis (no residual read); x:[M,H] -> bf16."""
    M, H = x.shape
    tm_, Mp = _tile(M, tm)
    xp = _pad2(x, Mp, H)
    out = pl.pallas_call(
        functools.partial(_ln_kernel, eps=eps),
        out_shape=jax.ShapeDtypeStruct((Mp, H), jnp.bfloat16),
        grid=(Mp // tm_,),
        in_specs=[
            pl.BlockSpec((tm_, H), lambda i: (i, 0)),
            pl.BlockSpec((1, H), lambda i: (0, 0)),
            pl.BlockSpec((1, H), lambda i: (0, 0)),
        ],
        out_specs=pl.BlockSpec((tm_, H), lambda i: (i, 0)),
        compiler_params=pltpu.CompilerParams(dimension_semantics=("parallel",)),
    )(xp, gamma, beta)
    return out[:M]


def _attention_kernel(q_ref, k_ref, v_ref, mb_ref, o_ref, *, scale):
    """One (batch, head, q-block) tile: q:(tq,Dh), k/v:(S,Dh), mb:(1,S)."""
    q = (q_ref[...].astype(jnp.float32) * scale).astype(q_ref.dtype)
    k = k_ref[...]
    v = v_ref[...]
    s = jax.lax.dot_general(q, k, (((1,), (1,)), ((), ())),
                            preferred_element_type=jnp.float32)   # (tq, S)
    s = s + mb_ref[...]                                           # (1,S) bcast
    s = s - jnp.max(s, axis=-1, keepdims=True)
    p = jnp.exp(s)
    denom = jnp.sum(p, axis=-1, keepdims=True)
    p = p * pl.reciprocal(denom, approx=True)
    o_ref[...] = jnp.dot(p.astype(v.dtype), v,
                         preferred_element_type=jnp.float32).astype(o_ref.dtype)


def attention(q, k, v, mask_bias, *, tq=256):
    """q,k,v: [B,nH,S,Dh] bf16;  mask_bias: [B,1,1,S] additive (0 / -10000)."""
    B, nH, S, Dh = q.shape
    if S <= tq or S % tq != 0:
        tq_ = S
    else:
        tq_ = tq
    kern = functools.partial(_attention_kernel, scale=1.0 / math.sqrt(Dh))
    return pl.pallas_call(
        kern,
        out_shape=jax.ShapeDtypeStruct((B, nH, S, Dh), jnp.bfloat16),
        grid=(B, nH, S // tq_),
        in_specs=[
            pl.BlockSpec((None, None, tq_, Dh), lambda b, h, i: (b, h, i, 0)),
            pl.BlockSpec((None, None, S, Dh), lambda b, h, i: (b, h, 0, 0)),
            pl.BlockSpec((None, None, S, Dh), lambda b, h, i: (b, h, 0, 0)),
            pl.BlockSpec((None, None, 1, S), lambda b, h, i: (b, 0, 0, 0)),
        ],
        out_specs=pl.BlockSpec((None, None, tq_, Dh),
                               lambda b, h, i: (b, h, i, 0)),
        compiler_params=pltpu.CompilerParams(
            dimension_semantics=("parallel", "parallel", "parallel")),
    )(q, k, v, mask_bias)


# ------------------------------ BERT forward --------------------------------

def bert_forward(params, input_ids, attention_mask, *, num_heads):
    B, S = input_ids.shape
    H = params["word_emb"].shape[1]
    Dh = H // num_heads
    M = B * S

    # --- embeddings (gather is glue; LN is a Pallas kernel, no zero residual) ---
    we = jnp.take(params["word_emb"], input_ids, axis=0)          # (B,S,H) f32
    pe = params["pos_emb"][:S][None, :, :]                        # (1,S,H)
    te = params["tok_emb"][0][None, None, :]                      # token_type_ids == 0
    emb = (we + pe + te).reshape(M, H)
    h = layernorm(emb, params["emb_ln_g"], params["emb_ln_b"])    # (M,H) bf16

    # additive mask bias, as in BertModel: (1 - mask) * -10000
    mask_bias = ((1.0 - attention_mask.astype(jnp.float32)) * -10000.0
                 ).reshape(B, 1, 1, S)

    for layer in params["layers"]:
        # --- self-attention: fused QKV projection, per-(b,h) attention ---
        qkv = dense(h, layer["wqkv"], layer["bqkv"])              # (M, 3H) bf16
        qkv = qkv.reshape(B, S, 3, num_heads, Dh).transpose(2, 0, 3, 1, 4)
        ctx = attention(qkv[0], qkv[1], qkv[2], mask_bias)        # (B,nH,S,Dh)
        ctx = ctx.transpose(0, 2, 1, 3).reshape(M, H)
        h = dense_add_ln(ctx, layer["wo"], layer["bo"], h,
                         layer["ln1_g"], layer["ln1_b"])

        # --- feed-forward (gelu fused into the up-proj epilogue) ---
        ff = dense(h, layer["wi"], layer["bi"], activation="gelu")
        h = dense_add_ln(ff, layer["wo2"], layer["bo2"], h,
                         layer["ln2_g"], layer["ln2_b"])

    # --- pooler (first token, tanh) + classifier head: tiny -> plain jnp.dot ---
    seq = h.reshape(B, S, H).astype(jnp.float32)
    cls = seq[:, 0, :]
    pooled = jnp.tanh(cls @ params["pool_w"] + params["pool_b"])
    logits = pooled @ params["fc_w"] + params["fc_b"]
    return logits


# ---------------------------- parameter init ---------------------------------

def init_params(key, *, vocab_size, hidden, num_layers, intermediate,
                max_pos, type_vocab, num_classes):
    keys = iter(jax.random.split(key, 8 + 8 * num_layers))

    def nrm(shape, dtype=jnp.float32, std=0.02):
        return (std * jax.random.normal(next(keys), shape,
                                        dtype=jnp.float32)).astype(dtype)

    def ones(shape):
        return jnp.ones(shape, jnp.float32)

    def zeros(shape):
        return jnp.zeros(shape, jnp.float32)

    bf16 = jnp.bfloat16
    p = {
        "word_emb": nrm((vocab_size, hidden)),
        "pos_emb": nrm((max_pos, hidden)),
        "tok_emb": nrm((type_vocab, hidden)),
        "emb_ln_g": ones((1, hidden)),
        "emb_ln_b": zeros((1, hidden)),
        "pool_w": nrm((hidden, hidden)),
        "pool_b": zeros((1, hidden)),
        "fc_w": nrm((hidden, num_classes)),
        "fc_b": zeros((1, num_classes)),
        "layers": [],
    }
    for _ in range(num_layers):
        p["layers"].append({
            "wqkv": nrm((hidden, 3 * hidden), bf16),   # fused Q|K|V
            "bqkv": zeros((1, 3 * hidden)),
            "wo": nrm((hidden, hidden), bf16), "bo": zeros((1, hidden)),
            "ln1_g": ones((1, hidden)), "ln1_b": zeros((1, hidden)),
            "wi": nrm((hidden, intermediate), bf16), "bi": zeros((1, intermediate)),
            "wo2": nrm((intermediate, hidden), bf16), "bo2": zeros((1, hidden)),
            "ln2_g": ones((1, hidden)), "ln2_b": zeros((1, hidden)),
        })
    return p


# ------------------------------------ main -----------------------------------

if __name__ == "__main__":
    B, S = 2, 8
    HIDDEN, NUM_HEADS, NUM_LAYERS, INTERMEDIATE = 32, 4, 2, 64
    VOCAB, MAX_POS, TYPE_VOCAB, NUM_CLASSES = 50, 16, 2, 3

    key = jax.random.PRNGKey(0)
    kp, kx = jax.random.split(key)

    params = init_params(
        kp, vocab_size=VOCAB, hidden=HIDDEN, num_layers=NUM_LAYERS,
        intermediate=INTERMEDIATE, max_pos=MAX_POS, type_vocab=TYPE_VOCAB,
        num_classes=NUM_CLASSES)

    input_ids = jax.random.randint(kx, (B, S), 0, VOCAB, dtype=jnp.int32)
    # padding mask: 1 = real token, 0 = padding (as in the docstring example)
    x_mask = jnp.array([[1, 1, 1, 1, 1, 1, 0, 0],
                        [1, 1, 1, 1, 0, 0, 0, 0]], dtype=jnp.int32)

    fwd = jax.jit(functools.partial(bert_forward, num_heads=NUM_HEADS))
    out = fwd(params, input_ids, x_mask)
    out = jax.block_until_ready(out)

    assert out.shape == (B, NUM_CLASSES), out.shape
    assert bool(jnp.all(jnp.isfinite(out)))
    print("KERNEL_OK")
</pallas_src>

<mosaic_0001>
module attributes {stable_mosaic.version = 11 : i64} {
  func.func @_dense_kernel(%arg0: i32, %arg1: i32, %arg2: i32, %arg3: memref<16x32xbf16, #tpu.memory_space<vmem>>, %arg4: memref<32x96xbf16, #tpu.memory_space<vmem>>, %arg5: memref<1x96xf32, #tpu.memory_space<vmem>>, %arg6: memref<16x96xbf16, #tpu.memory_space<vmem>>, %arg7: memref<16x96xf32, #tpu.memory_space<vmem>>) attributes {dimension_semantics = [#tpu.dimension_semantics<parallel>, #tpu.dimension_semantics<parallel>, #tpu.dimension_semantics<arbitrary>], iteration_bounds = array<i64: 1, 1, 1>, scalar_prefetch = 0 : i64, scratch_operands = 1 : i64, tpu.core_type = #tpu.core_type<tc>, window_params = [{transform_indices = @transform_0, window_bounds = array<i64: 16, 32>}, {transform_indices = @transform_1, window_bounds = array<i64: 32, 96>}, {transform_indices = @transform_2, window_bounds = array<i64: 1, 96>}, {transform_indices = @transform_3, window_bounds = array<i64: 16, 96>}]} {
    %c0_i32 = arith.constant 0 : i32
    %0 = arith.cmpi eq, %arg2, %c0_i32 : i32
    %1 = arith.extui %0 : i1 to i32
    %c0_i32_0 = arith.constant 0 : i32
    %2 = arith.cmpi ne, %1, %c0_i32_0 : i32
    scf.if %2 {
      %cst_10 = arith.constant 0.000000e+00 : f32
      %12 = vector.broadcast %cst_10 : f32 to vector<16x96xf32>
      %c0_11 = arith.constant 0 : index
      %c0_12 = arith.constant 0 : index
      %13 = vector.load %arg7[%c0_11, %c0_12] : memref<16x96xf32, #tpu.memory_space<vmem>>, vector<16x96xf32>
      tpu.vector_store %arg7[%c0_11, %c0_12], %12 {strides = array<i32>} : memref<16x96xf32, #tpu.memory_space<vmem>>, vector<16x96xf32>,
    } else {
    }
    %c0 = arith.constant 0 : index
    %c0_1 = arith.constant 0 : index
    %3 = vector.load %arg7[%c0, %c0_1] : memref<16x96xf32, #tpu.memory_space<vmem>>, vector<16x96xf32>
    %c0_2 = arith.constant 0 : index
    %c0_3 = arith.constant 0 : index
    %4 = vector.load %arg3[%c0_2, %c0_3] : memref<16x32xbf16, #tpu.memory_space<vmem>>, vector<16x32xbf16>
    %c0_4 = arith.constant 0 : index
    %c0_5 = arith.constant 0 : index
    %5 = vector.load %arg4[%c0_4, %c0_5] : memref<32x96xbf16, #tpu.memory_space<vmem>>, vector<32x96xbf16>
    %cst = arith.constant dense<0.000000e+00> : vector<16x96xf32>
    %6 = tpu.matmul %4, %5, %cst {dimension_numbers = #tpu.dot_dimension_numbers<[1], [0], [0], [1], [0, 0, 1, 1], [], []>} : vector<16x32xbf16>, vector<32x96xbf16>, vector<16x96xf32> -> vector<16x96xf32>
    %7 = arith.addf %3, %6 : vector<16x96xf32>
    %c0_6 = arith.constant 0 : index
    %c0_7 = arith.constant 0 : index
    %8 = vector.load %arg7[%c0_6, %c0_7] : memref<16x96xf32, #tpu.memory_space<vmem>>, vector<16x96xf32>
    tpu.vector_store %arg7[%c0_6, %c0_7], %7 {strides = array<i32>} : memref<16x96xf32, #tpu.memory_space<vmem>>, vector<16x96xf32>,
    %c0_i32_8 = arith.constant 0 : i32
    %9 = arith.cmpi eq, %arg2, %c0_i32_8 : i32
    %10 = arith.extui %9 : i1 to i32
    %c0_i32_9 = arith.constant 0 : i32
    %11 = arith.cmpi ne, %10, %c0_i32_9 : i32
    scf.if %11 {
      %c0_10 = arith.constant 0 : index
      %c0_11 = arith.constant 0 : index
      %12 = vector.load %arg7[%c0_10, %c0_11] : memref<16x96xf32, #tpu.memory_space<vmem>>, vector<16x96xf32>
      %c0_12 = arith.constant 0 : index
      %c0_13 = arith.constant 0 : index
      %13 = vector.load %arg5[%c0_12, %c0_13] : memref<1x96xf32, #tpu.memory_space<vmem>>, vector<1x96xf32>
      %14 = vector.broadcast %13 : vector<1x96xf32> to vector<16x96xf32>
      %15 = arith.addf %12, %14 : vector<16x96xf32>
      %16 = arith.truncf %15 : vector<16x96xf32> to vector<16x96xbf16>
      %c0_14 = arith.constant 0 : index
      %c0_15 = arith.constant 0 : index
      %17 = vector.load %arg6[%c0_14, %c0_15] : memref<16x96xbf16, #tpu.memory_space<vmem>>, vector<16x96xbf16>
      tpu.vector_store %arg6[%c0_14, %c0_15], %16 {strides = array<i32>} : memref<16x96xbf16, #tpu.memory_space<vmem>>, vector<16x96xbf16>,
    } else {
    }
    return
  }
  func.func @transform_0(%arg0: i32, %arg1: i32, %arg2: i32) -> (i32, i32) {
    %c0_i32 = arith.constant 0 : i32
    return %arg0, %arg2 : i32, i32
  }
  func.func @transform_1(%arg0: i32, %arg1: i32, %arg2: i32) -> (i32, i32) {
    %c0_i32 = arith.constant 0 : i32
    return %arg2, %arg1 : i32, i32
  }
  func.func @transform_2(%arg0: i32, %arg1: i32, %arg2: i32) -> (i32, i32) {
    %c0_i32 = arith.constant 0 : i32
    %c0_i32_0 = arith.constant 0 : i32
    return %c0_i32, %arg1 : i32, i32
  }
  func.func @transform_3(%arg0: i32, %arg1: i32, %arg2: i32) -> (i32, i32) {
    %c0_i32 = arith.constant 0 : i32
    return %arg0, %arg1 : i32, i32
  }
}

module attributes {stable_mosaic.version = 11 : i64} {
  func.func @_ln_kernel(%arg0: i32, %arg1: memref<16x32xf32, #tpu.memory_space<vmem>>, %arg2: memref<1x32xf32, #tpu.memory_space<vmem>>, %arg3: memref<1x32xf32, #tpu.memory_space<vmem>>, %arg4: memref<16x32xbf16, #tpu.memory_space<vmem>>) attributes {dimension_semantics = [#tpu.dimension_semantics<parallel>], iteration_bounds = array<i64: 1>, scalar_prefetch = 0 : i64, scratch_operands = 0 : i64, tpu.core_type = #tpu.core_type<tc>, window_params = [{transform_indices = @transform_0, window_bounds = array<i64: 16, 32>}, {pipeline_mode = #tpu.pipeline_mode<synchronous>, transform_indices = @transform_1, window_bounds = array<i64: 1, 32>}, {pipeline_mode = #tpu.pipeline_mode<synchronous>, transform_indices = @transform_2, window_bounds = array<i64: 1, 32>}, {transform_indices = @transform_3, window_bounds = array<i64: 16, 32>}]} {
    %c0 = arith.constant 0 : index
    %c0_0 = arith.constant 0 : index
    %0 = vector.load %arg1[%c0, %c0_0] : memref<16x32xf32, #tpu.memory_space<vmem>>, vector<16x32xf32>
    %cst = arith.constant dense<0.000000e+00> : vector<16xf32>
    %1 = vector.multi_reduction <add>, %0, %cst [1] : vector<16x32xf32> to vector<16xf32>
    %2 = vector.shape_cast %1 : vector<16xf32> to vector<16x1xf32>
    %cst_1 = arith.constant 3.200000e+01 : f32
    %3 = vector.broadcast %cst_1 : f32 to vector<16x1xf32>
    %4 = arith.divf %2, %3 : vector<16x1xf32>
    %5 = vector.broadcast %4 : vector<16x1xf32> to vector<16x32xf32>
    %6 = arith.subf %0, %5 : vector<16x32xf32>
    %7 = arith.mulf %6, %6 : vector<16x32xf32>
    %cst_2 = arith.constant dense<0.000000e+00> : vector<16xf32>
    %8 = vector.multi_reduction <add>, %7, %cst_2 [1] : vector<16x32xf32> to vector<16xf32>
    %9 = vector.shape_cast %8 : vector<16xf32> to vector<16x1xf32>
    %cst_3 = arith.constant 3.200000e+01 : f32
    %10 = vector.broadcast %cst_3 : f32 to vector<16x1xf32>
    %11 = arith.divf %9, %10 : vector<16x1xf32>
    %12 = vector.broadcast %4 : vector<16x1xf32> to vector<16x32xf32>
    %13 = arith.subf %0, %12 : vector<16x32xf32>
    %cst_4 = arith.constant 9.99999996E-13 : f32
    %14 = vector.broadcast %cst_4 : f32 to vector<16x1xf32>
    %15 = arith.addf %11, %14 : vector<16x1xf32>
    %16 = math.rsqrt %15 : vector<16x1xf32>
    %17 = vector.broadcast %16 : vector<16x1xf32> to vector<16x32xf32>
    %18 = arith.mulf %13, %17 : vector<16x32xf32>
    %c0_5 = arith.constant 0 : index
    %c0_6 = arith.constant 0 : index
    %19 = vector.load %arg2[%c0_5, %c0_6] : memref<1x32xf32, #tpu.memory_space<vmem>>, vector<1x32xf32>
    %20 = vector.broadcast %19 : vector<1x32xf32> to vector<16x32xf32>
    %21 = arith.mulf %18, %20 : vector<16x32xf32>
    %c0_7 = arith.constant 0 : index
    %c0_8 = arith.constant 0 : index
    %22 = vector.load %arg3[%c0_7, %c0_8] : memref<1x32xf32, #tpu.memory_space<vmem>>, vector<1x32xf32>
    %23 = vector.broadcast %22 : vector<1x32xf32> to vector<16x32xf32>
    %24 = arith.addf %21, %23 : vector<16x32xf32>
    %25 = arith.truncf %24 : vector<16x32xf32> to vector<16x32xbf16>
    %c0_9 = arith.constant 0 : index
    %c0_10 = arith.constant 0 : index
    %26 = vector.load %arg4[%c0_9, %c0_10] : memref<16x32xbf16, #tpu.memory_space<vmem>>, vector<16x32xbf16>
    tpu.vector_store %arg4[%c0_9, %c0_10], %25 {strides = array<i32>} : memref<16x32xbf16, #tpu.memory_space<vmem>>, vector<16x32xbf16>,
    return
  }
  func.func @transform_0(%arg0: i32) -> (i32, i32) {
    %c0_i32 = arith.constant 0 : i32
    %c0_i32_0 = arith.constant 0 : i32
    return %arg0, %c0_i32 : i32, i32
  }
  func.func @transform_1(%arg0: i32) -> (i32, i32) {
    %c0_i32 = arith.constant 0 : i32
    %c0_i32_0 = arith.constant 0 : i32
    %c0_i32_1 = arith.constant 0 : i32
    return %c0_i32, %c0_i32_0 : i32, i32
  }
  func.func @transform_2(%arg0: i32) -> (i32, i32) {
    %c0_i32 = arith.constant 0 : i32
    %c0_i32_0 = arith.constant 0 : i32
    %c0_i32_1 = arith.constant 0 : i32
    return %c0_i32, %c0_i32_0 : i32, i32
  }
  func.func @transform_3(%arg0: i32) -> (i32, i32) {
    %c0_i32 = arith.constant 0 : i32
    %c0_i32_0 = arith.constant 0 : i32
    return %arg0, %c0_i32 : i32, i32
  }
}

module attributes {stable_mosaic.version = 11 : i64} {
  func.func @_attention_kernel(%arg0: i32, %arg1: i32, %arg2: i32, %arg3: memref<1x1x8x8xbf16, #tpu.memory_space<vmem>>, %arg4: memref<1x1x8x8xbf16, #tpu.memory_space<vmem>>, %arg5: memref<1x1x8x8xbf16, #tpu.memory_space<vmem>>, %arg6: memref<1x1x1x8xf32, #tpu.memory_space<vmem>>, %arg7: memref<1x1x8x8xbf16, #tpu.memory_space<vmem>>) attributes {dimension_semantics = [#tpu.dimension_semantics<parallel>, #tpu.dimension_semantics<parallel>, #tpu.dimension_semantics<parallel>], iteration_bounds = array<i64: 2, 4, 1>, scalar_prefetch = 0 : i64, scratch_operands = 0 : i64, tpu.core_type = #tpu.core_type<tc>, window_params = [{transform_indices = @transform_0, window_bounds = array<i64: 1, 1, 8, 8>}, {transform_indices = @transform_1, window_bounds = array<i64: 1, 1, 8, 8>}, {transform_indices = @transform_2, window_bounds = array<i64: 1, 1, 8, 8>}, {transform_indices = @transform_3, window_bounds = array<i64: 1, 1, 1, 8>}, {transform_indices = @transform_4, window_bounds = array<i64: 1, 1, 8, 8>}]} {
    %c0 = arith.constant 0 : index
    %c0_0 = arith.constant 0 : index
    %c0_1 = arith.constant 0 : index
    %c0_2 = arith.constant 0 : index
    %0 = vector.load %arg3[%c0, %c0_0, %c0_1, %c0_2] : memref<1x1x8x8xbf16, #tpu.memory_space<vmem>>, vector<1x1x8x8xbf16>
    %1 = vector.shape_cast %0 : vector<1x1x8x8xbf16> to vector<8x8xbf16>
    %2 = arith.extf %1 : vector<8x8xbf16> to vector<8x8xf32>
    %cst = arith.constant 0.353553385 : f32
    %3 = vector.broadcast %cst : f32 to vector<8x8xf32>
    %4 = arith.mulf %2, %3 : vector<8x8xf32>
    %5 = arith.truncf %4 : vector<8x8xf32> to vector<8x8xbf16>
    %c0_3 = arith.constant 0 : index
    %c0_4 = arith.constant 0 : index
    %c0_5 = arith.constant 0 : index
    %c0_6 = arith.constant 0 : index
    %6 = vector.load %arg4[%c0_3, %c0_4, %c0_5, %c0_6] : memref<1x1x8x8xbf16, #tpu.memory_space<vmem>>, vector<1x1x8x8xbf16>
    %7 = vector.shape_cast %6 : vector<1x1x8x8xbf16> to vector<8x8xbf16>
    %c0_7 = arith.constant 0 : index
    %c0_8 = arith.constant 0 : index
    %c0_9 = arith.constant 0 : index
    %c0_10 = arith.constant 0 : index
    %8 = vector.load %arg5[%c0_7, %c0_8, %c0_9, %c0_10] : memref<1x1x8x8xbf16, #tpu.memory_space<vmem>>, vector<1x1x8x8xbf16>
    %9 = vector.shape_cast %8 : vector<1x1x8x8xbf16> to vector<8x8xbf16>
    %cst_11 = arith.constant dense<0.000000e+00> : vector<8x8xf32>
    %10 = tpu.matmul %5, %7, %cst_11 {dimension_numbers = #tpu.dot_dimension_numbers<[1], [1], [0], [0], [0, 0, 1, 0], [], []>} : vector<8x8xbf16>, vector<8x8xbf16>, vector<8x8xf32> -> vector<8x8xf32>
    %c0_12 = arith.constant 0 : index
    %c0_13 = arith.constant 0 : index
    %c0_14 = arith.constant 0 : index
    %c0_15 = arith.constant 0 : index
    %11 = vector.load %arg6[%c0_12, %c0_13, %c0_14, %c0_15] : memref<1x1x1x8xf32, #tpu.memory_space<vmem>>, vector<1x1x1x8xf32>
    %12 = vector.shape_cast %11 : vector<1x1x1x8xf32> to vector<1x8xf32>
    %13 = vector.broadcast %12 : vector<1x8xf32> to vector<8x8xf32>
    %14 = arith.addf %10, %13 : vector<8x8xf32>
    %cst_16 = arith.constant dense<0xFF800000> : vector<8xf32>
    %15 = vector.multi_reduction <maximumf>, %14, %cst_16 [1] : vector<8x8xf32> to vector<8xf32>
    %16 = vector.shape_cast %15 : vector<8xf32> to vector<8x1xf32>
    %17 = vector.broadcast %16 : vector<8x1xf32> to vector<8x8xf32>
    %18 = arith.subf %14, %17 : vector<8x8xf32>
    %19 = math.exp %18 : vector<8x8xf32>
    %cst_17 = arith.constant dense<0.000000e+00> : vector<8xf32>
    %20 = vector.multi_reduction <add>, %19, %cst_17 [1] : vector<8x8xf32> to vector<8xf32>
    %21 = vector.shape_cast %20 : vector<8xf32> to vector<8x1xf32>
    %22 = tpu.reciprocal %21 {approx = true} : vector<8x1xf32> -> vector<8x1xf32>
    %23 = vector.broadcast %22 : vector<8x1xf32> to vector<8x8xf32>
    %24 = arith.mulf %19, %23 : vector<8x8xf32>
    %25 = arith.truncf %24 : vector<8x8xf32> to vector<8x8xbf16>
    %cst_18 = arith.constant dense<0.000000e+00> : vector<8x8xf32>
    %26 = tpu.matmul %25, %9, %cst_18 {dimension_numbers = #tpu.dot_dimension_numbers<[1], [0], [0], [1], [0, 0, 1, 1], [], []>} : vector<8x8xbf16>, vector<8x8xbf16>, vector<8x8xf32> -> vector<8x8xf32>
    %27 = arith.truncf %26 : vector<8x8xf32> to vector<8x8xbf16>
    %c0_19 = arith.constant 0 : index
    %c0_20 = arith.constant 0 : index
    %c0_21 = arith.constant 0 : index
    %c0_22 = arith.constant 0 : index
    %28 = vector.load %arg7[%c0_19, %c0_20, %c0_21, %c0_22] : memref<1x1x8x8xbf16, #tpu.memory_space<vmem>>, vector<1x1x8x8xbf16>
    %29 = vector.shape_cast %28 : vector<1x1x8x8xbf16> to vector<8x8xbf16>
    %30 = vector.shape_cast %27 : vector<8x8xbf16> to vector<1x1x8x8xbf16>
    tpu.vector_store %arg7[%c0_19, %c0_20, %c0_21, %c0_22], %30 {strides = array<i32>} : memref<1x1x8x8xbf16, #tpu.memory_space<vmem>>, vector<1x1x8x8xbf16>,
    return
  }
  func.func @transform_0(%arg0: i32, %arg1: i32, %arg2: i32) -> (i32, i32, i32, i32) {
    %c0_i32 = arith.constant 0 : i32
    %c0_i32_0 = arith.constant 0 : i32
    return %arg0, %arg1, %arg2, %c0_i32 : i32, i32, i32, i32
  }
  func.func @transform_1(%arg0: i32, %arg1: i32, %arg2: i32) -> (i32, i32, i32, i32) {
    %c0_i32 = arith.constant 0 : i32
    %c0_i32_0 = arith.constant 0 : i32
    %c0_i32_1 = arith.constant 0 : i32
    return %arg0, %arg1, %c0_i32, %c0_i32_0 : i32, i32, i32, i32
  }
  func.func @transform_2(%arg0: i32, %arg1: i32, %arg2: i32) -> (i32, i32, i32, i32) {
    %c0_i32 = arith.constant 0 : i32
    %c0_i32_0 = arith.constant 0 : i32
    %c0_i32_1 = arith.constant 0 : i32
    return %arg0, %arg1, %c0_i32, %c0_i32_0 : i32, i32, i32, i32
  }
  func.func @transform_3(%arg0: i32, %arg1: i32, %arg2: i32) -> (i32, i32, i32, i32) {
    %c0_i32 = arith.constant 0 : i32
    %c0_i32_0 = arith.constant 0 : i32
    %c0_i32_1 = arith.constant 0 : i32
    %c0_i32_2 = arith.constant 0 : i32
    return %arg0, %c0_i32, %c0_i32_0, %c0_i32_1 : i32, i32, i32, i32
  }
  func.func @transform_4(%arg0: i32, %arg1: i32, %arg2: i32) -> (i32, i32, i32, i32) {
    %c0_i32 = arith.constant 0 : i32
    %c0_i32_0 = arith.constant 0 : i32
    return %arg0, %arg1, %arg2, %c0_i32 : i32, i32, i32, i32
  }
}

module attributes {stable_mosaic.version = 11 : i64} {
  func.func @_dense_res_ln_kernel(%arg0: i32, %arg1: i32, %arg2: memref<16x32xbf16, #tpu.memory_space<vmem>>, %arg3: memref<32x32xbf16, #tpu.memory_space<vmem>>, %arg4: memref<1x32xf32, #tpu.memory_space<vmem>>, %arg5: memref<16x32xbf16, #tpu.memory_space<vmem>>, %arg6: memref<1x32xf32, #tpu.memory_space<vmem>>, %arg7: memref<1x32xf32, #tpu.memory_space<vmem>>, %arg8: memref<16x32xbf16, #tpu.memory_space<vmem>>, %arg9: memref<16x32xf32, #tpu.memory_space<vmem>>) attributes {dimension_semantics = [#tpu.dimension_semantics<parallel>, #tpu.dimension_semantics<arbitrary>], iteration_bounds = array<i64: 1, 1>, scalar_prefetch = 0 : i64, scratch_operands = 1 : i64, tpu.core_type = #tpu.core_type<tc>, window_params = [{transform_indices = @transform_0, window_bounds = array<i64: 16, 32>}, {transform_indices = @transform_1, window_bounds = array<i64: 32, 32>}, {pipeline_mode = #tpu.pipeline_mode<synchronous>, transform_indices = @transform_2, window_bounds = array<i64: 1, 32>}, {transform_indices = @transform_3, window_bounds = array<i64: 16, 32>}, {pipeline_mode = #tpu.pipeline_mode<synchronous>, transform_indices = @transform_4, window_bounds = array<i64: 1, 32>}, {pipeline_mode = #tpu.pipeline_mode<synchronous>, transform_indices = @transform_5, window_bounds = array<i64: 1, 32>}, {transform_indices = @transform_6, window_bounds = array<i64: 16, 32>}]} {
    %c0_i32 = arith.constant 0 : i32
    %0 = arith.cmpi eq, %arg1, %c0_i32 : i32
    %1 = arith.extui %0 : i1 to i32
    %c0_i32_0 = arith.constant 0 : i32
    %2 = arith.cmpi ne, %1, %c0_i32_0 : i32
    scf.if %2 {
      %cst_10 = arith.constant 0.000000e+00 : f32
      %12 = vector.broadcast %cst_10 : f32 to vector<16x32xf32>
      %c0_11 = arith.constant 0 : index
      %c0_12 = arith.constant 0 : index
      %13 = vector.load %arg9[%c0_11, %c0_12] : memref<16x32xf32, #tpu.memory_space<vmem>>, vector<16x32xf32>
      tpu.vector_store %arg9[%c0_11, %c0_12], %12 {strides = array<i32>} : memref<16x32xf32, #tpu.memory_space<vmem>>, vector<16x32xf32>,
    } else {
    }
    %c0 = arith.constant 0 : index
    %c0_1 = arith.constant 0 : index
    %3 = vector.load %arg9[%c0, %c0_1] : memref<16x32xf32, #tpu.memory_space<vmem>>, vector<16x32xf32>
    %c0_2 = arith.constant 0 : index
    %c0_3 = arith.constant 0 : index
    %4 = vector.load %arg2[%c0_2, %c0_3] : memref<16x32xbf16, #tpu.memory_space<vmem>>, vector<16x32xbf16>
    %c0_4 = arith.constant 0 : index
    %c0_5 = arith.constant 0 : index
    %5 = vector.load %arg3[%c0_4, %c0_5] : memref<32x32xbf16, #tpu.memory_space<vmem>>, vector<32x32xbf16>
    %cst = arith.constant dense<0.000000e+00> : vector<16x32xf32>
    %6 = tpu.matmul %4, %5, %cst {dimension_numbers = #tpu.dot_dimension_numbers<[1], [0], [0], [1], [0, 0, 1, 1], [], []>} : vector<16x32xbf16>, vector<32x32xbf16>, vector<16x32xf32> -> vector<16x32xf32>
    %7 = arith.addf %3, %6 : vector<16x32xf32>
    %c0_6 = arith.constant 0 : index
    %c0_7 = arith.constant 0 : index
    %8 = vector.load %arg9[%c0_6, %c0_7] : memref<16x32xf32, #tpu.memory_space<vmem>>, vector<16x32xf32>
    tpu.vector_store %arg9[%c0_6, %c0_7], %7 {strides = array<i32>} : memref<16x32xf32, #tpu.memory_space<vmem>>, vector<16x32xf32>,
    %c0_i32_8 = arith.constant 0 : i32
    %9 = arith.cmpi eq, %arg1, %c0_i32_8 : i32
    %10 = arith.extui %9 : i1 to i32
    %c0_i32_9 = arith.constant 0 : i32
    %11 = arith.cmpi ne, %10, %c0_i32_9 : i32
    scf.if %11 {
      %c0_10 = arith.constant 0 : index
      %c0_11 = arith.constant 0 : index
      %12 = vector.load %arg9[%c0_10, %c0_11] : memref<16x32xf32, #tpu.memory_space<vmem>>, vector<16x32xf32>
      %c0_12 = arith.constant 0 : index
      %c0_13 = arith.constant 0 : index
      %13 = vector.load %arg4[%c0_12, %c0_13] : memref<1x32xf32, #tpu.memory_space<vmem>>, vector<1x32xf32>
      %14 = vector.broadcast %13 : vector<1x32xf32> to vector<16x32xf32>
      %15 = arith.addf %12, %14 : vector<16x32xf32>
      %c0_14 = arith.constant 0 : index
      %c0_15 = arith.constant 0 : index
      %16 = vector.load %arg5[%c0_14, %c0_15] : memref<16x32xbf16, #tpu.memory_space<vmem>>, vector<16x32xbf16>
      %17 = arith.extf %16 : vector<16x32xbf16> to vector<16x32xf32>
      %18 = arith.addf %15, %17 : vector<16x32xf32>
      %cst_16 = arith.constant dense<0.000000e+00> : vector<16xf32>
      %19 = vector.multi_reduction <add>, %18, %cst_16 [1] : vector<16x32xf32> to vector<16xf32>
      %20 = vector.shape_cast %19 : vector<16xf32> to vector<16x1xf32>
      %cst_17 = arith.constant 3.200000e+01 : f32
      %21 = vector.broadcast %cst_17 : f32 to vector<16x1xf32>
      %22 = arith.divf %20, %21 : vector<16x1xf32>
      %23 = vector.broadcast %22 : vector<16x1xf32> to vector<16x32xf32>
      %24 = arith.subf %18, %23 : vector<16x32xf32>
      %25 = arith.mulf %24, %24 : vector<16x32xf32>
      %cst_18 = arith.constant dense<0.000000e+00> : vector<16xf32>
      %26 = vector.multi_reduction <add>, %25, %cst_18 [1] : vector<16x32xf32> to vector<16xf32>
      %27 = vector.shape_cast %26 : vector<16xf32> to vector<16x1xf32>
      %cst_19 = arith.constant 3.200000e+01 : f32
      %28 = vector.broadcast %cst_19 : f32 to vector<16x1xf32>
      %29 = arith.divf %27, %28 : vector<16x1xf32>
      %30 = vector.broadcast %22 : vector<16x1xf32> to vector<16x32xf32>
      %31 = arith.subf %18, %30 : vector<16x32xf32>
      %cst_20 = arith.constant 9.99999996E-13 : f32
      %32 = vector.broadcast %cst_20 : f32 to vector<16x1xf32>
      %33 = arith.addf %29, %32 : vector<16x1xf32>
      %34 = math.rsqrt %33 : vector<16x1xf32>
      %35 = vector.broadcast %34 : vector<16x1xf32> to vector<16x32xf32>
      %36 = arith.mulf %31, %35 : vector<16x32xf32>
      %c0_21 = arith.constant 0 : index
      %c0_22 = arith.constant 0 : index
      %37 = vector.load %arg6[%c0_21, %c0_22] : memref<1x32xf32, #tpu.memory_space<vmem>>, vector<1x32xf32>
      %38 = vector.broadcast %37 : vector<1x32xf32> to vector<16x32xf32>
      %39 = arith.mulf %36, %38 : vector<16x32xf32>
      %c0_23 = arith.constant 0 : index
      %c0_24 = arith.constant 0 : index
      %40 = vector.load %arg7[%c0_23, %c0_24] : memref<1x32xf32, #tpu.memory_space<vmem>>, vector<1x32xf32>
      %41 = vector.broadcast %40 : vector<1x32xf32> to vector<16x32xf32>
      %42 = arith.addf %39, %41 : vector<16x32xf32>
      %43 = arith.truncf %42 : vector<16x32xf32> to vector<16x32xbf16>
      %c0_25 = arith.constant 0 : index
      %c0_26 = arith.constant 0 : index
      %44 = vector.load %arg8[%c0_25, %c0_26] : memref<16x32xbf16, #tpu.memory_space<vmem>>, vector<16x32xbf16>
      tpu.vector_store %arg8[%c0_25, %c0_26], %43 {strides = array<i32>} : memref<16x32xbf16, #tpu.memory_space<vmem>>, vector<16x32xbf16>,
    } else {
    }
    return
  }
  func.func @transform_0(%arg0: i32, %arg1: i32) -> (i32, i32) {
    %c0_i32 = arith.constant 0 : i32
    return %arg0, %arg1 : i32, i32
  }
  func.func @transform_1(%arg0: i32, %arg1: i32) -> (i32, i32) {
    %c0_i32 = arith.constant 0 : i32
    %c0_i32_0 = arith.constant 0 : i32
    return %arg1, %c0_i32 : i32, i32
  }
  func.func @transform_2(%arg0: i32, %arg1: i32) -> (i32, i32) {
    %c0_i32 = arith.constant 0 : i32
    %c0_i32_0 = arith.constant 0 : i32
    %c0_i32_1 = arith.constant 0 : i32
    return %c0_i32, %c0_i32_0 : i32, i32
  }
  func.func @transform_3(%arg0: i32, %arg1: i32) -> (i32, i32) {
    %c0_i32 = arith.constant 0 : i32
    %c0_i32_0 = arith.constant 0 : i32
    return %arg0, %c0_i32 : i32, i32
  }
  func.func @transform_4(%arg0: i32, %arg1: i32) -> (i32, i32) {
    %c0_i32 = arith.constant 0 : i32
    %c0_i32_0 = arith.constant 0 : i32
    %c0_i32_1 = arith.constant 0 : i32
    return %c0_i32, %c0_i32_0 : i32, i32
  }
  func.func @transform_5(%arg0: i32, %arg1: i32) -> (i32, i32) {
    %c0_i32 = arith.constant 0 : i32
    %c0_i32_0 = arith.constant 0 : i32
    %c0_i32_1 = arith.constant 0 : i32
    return %c0_i32, %c0_i32_0 : i32, i32
  }
  func.func @transform_6(%arg0: i32, %arg1: i32) -> (i32, i32) {
    %c0_i32 = arith.constant 0 : i32
    %c0_i32_0 = arith.constant 0 : i32
    return %arg0, %c0_i32 : i32, i32
  }
}

module attributes {stable_mosaic.version = 11 : i64} {
  func.func @_dense_kernel(%arg0: i32, %arg1: i32, %arg2: i32, %arg3: memref<16x32xbf16, #tpu.memory_space<vmem>>, %arg4: memref<32x64xbf16, #tpu.memory_space<vmem>>, %arg5: memref<1x64xf32, #tpu.memory_space<vmem>>, %arg6: memref<16x64xbf16, #tpu.memory_space<vmem>>, %arg7: memref<16x64xf32, #tpu.memory_space<vmem>>) attributes {dimension_semantics = [#tpu.dimension_semantics<parallel>, #tpu.dimension_semantics<parallel>, #tpu.dimension_semantics<arbitrary>], iteration_bounds = array<i64: 1, 1, 1>, scalar_prefetch = 0 : i64, scratch_operands = 1 : i64, tpu.core_type = #tpu.core_type<tc>, window_params = [{transform_indices = @transform_0, window_bounds = array<i64: 16, 32>}, {transform_indices = @transform_1, window_bounds = array<i64: 32, 64>}, {transform_indices = @transform_2, window_bounds = array<i64: 1, 64>}, {transform_indices = @transform_3, window_bounds = array<i64: 16, 64>}]} {
    %c0_i32 = arith.constant 0 : i32
    %0 = arith.cmpi eq, %arg2, %c0_i32 : i32
    %1 = arith.extui %0 : i1 to i32
    %c0_i32_0 = arith.constant 0 : i32
    %2 = arith.cmpi ne, %1, %c0_i32_0 : i32
    scf.if %2 {
      %cst_10 = arith.constant 0.000000e+00 : f32
      %12 = vector.broadcast %cst_10 : f32 to vector<16x64xf32>
      %c0_11 = arith.constant 0 : index
      %c0_12 = arith.constant 0 : index
      %13 = vector.load %arg7[%c0_11, %c0_12] : memref<16x64xf32, #tpu.memory_space<vmem>>, vector<16x64xf32>
      tpu.vector_store %arg7[%c0_11, %c0_12], %12 {strides = array<i32>} : memref<16x64xf32, #tpu.memory_space<vmem>>, vector<16x64xf32>,
    } else {
    }
    %c0 = arith.constant 0 : index
    %c0_1 = arith.constant 0 : index
    %3 = vector.load %arg7[%c0, %c0_1] : memref<16x64xf32, #tpu.memory_space<vmem>>, vector<16x64xf32>
    %c0_2 = arith.constant 0 : index
    %c0_3 = arith.constant 0 : index
    %4 = vector.load %arg3[%c0_2, %c0_3] : memref<16x32xbf16, #tpu.memory_space<vmem>>, vector<16x32xbf16>
    %c0_4 = arith.constant 0 : index
    %c0_5 = arith.constant 0 : index
    %5 = vector.load %arg4[%c0_4, %c0_5] : memref<32x64xbf16, #tpu.memory_space<vmem>>, vector<32x64xbf16>
    %cst = arith.constant dense<0.000000e+00> : vector<16x64xf32>
    %6 = tpu.matmul %4, %5, %cst {dimension_numbers = #tpu.dot_dimension_numbers<[1], [0], [0], [1], [0, 0, 1, 1], [], []>} : vector<16x32xbf16>, vector<32x64xbf16>, vector<16x64xf32> -> vector<16x64xf32>
    %7 = arith.addf %3, %6 : vector<16x64xf32>
    %c0_6 = arith.constant 0 : index
    %c0_7 = arith.constant 0 : index
    %8 = vector.load %arg7[%c0_6, %c0_7] : memref<16x64xf32, #tpu.memory_space<vmem>>, vector<16x64xf32>
    tpu.vector_store %arg7[%c0_6, %c0_7], %7 {strides = array<i32>} : memref<16x64xf32, #tpu.memory_space<vmem>>, vector<16x64xf32>,
    %c0_i32_8 = arith.constant 0 : i32
    %9 = arith.cmpi eq, %arg2, %c0_i32_8 : i32
    %10 = arith.extui %9 : i1 to i32
    %c0_i32_9 = arith.constant 0 : i32
    %11 = arith.cmpi ne, %10, %c0_i32_9 : i32
    scf.if %11 {
      %c0_10 = arith.constant 0 : index
      %c0_11 = arith.constant 0 : index
      %12 = vector.load %arg7[%c0_10, %c0_11] : memref<16x64xf32, #tpu.memory_space<vmem>>, vector<16x64xf32>
      %c0_12 = arith.constant 0 : index
      %c0_13 = arith.constant 0 : index
      %13 = vector.load %arg5[%c0_12, %c0_13] : memref<1x64xf32, #tpu.memory_space<vmem>>, vector<1x64xf32>
      %14 = vector.broadcast %13 : vector<1x64xf32> to vector<16x64xf32>
      %15 = arith.addf %12, %14 : vector<16x64xf32>
      %cst_14 = arith.constant 5.000000e-01 : f32
      %16 = vector.broadcast %cst_14 : f32 to vector<16x64xf32>
      %17 = arith.mulf %16, %15 : vector<16x64xf32>
      %cst_15 = arith.constant 0.707106769 : f32
      %18 = vector.broadcast %cst_15 : f32 to vector<16x64xf32>
      %19 = arith.mulf %15, %18 : vector<16x64xf32>
      %20 = math.erf %19 : vector<16x64xf32>
      %cst_16 = arith.constant 1.000000e+00 : f32
      %21 = vector.broadcast %cst_16 : f32 to vector<16x64xf32>
      %22 = arith.addf %21, %20 : vector<16x64xf32>
      %23 = arith.mulf %17, %22 : vector<16x64xf32>
      %24 = arith.truncf %23 : vector<16x64xf32> to vector<16x64xbf16>
      %c0_17 = arith.constant 0 : index
      %c0_18 = arith.constant 0 : index
      %25 = vector.load %arg6[%c0_17, %c0_18] : memref<16x64xbf16, #tpu.memory_space<vmem>>, vector<16x64xbf16>
      tpu.vector_store %arg6[%c0_17, %c0_18], %24 {strides = array<i32>} : memref<16x64xbf16, #tpu.memory_space<vmem>>, vector<16x64xbf16>,
    } else {
    }
    return
  }
  func.func @transform_0(%arg0: i32, %arg1: i32, %arg2: i32) -> (i32, i32) {
    %c0_i32 = arith.constant 0 : i32
    return %arg0, %arg2 : i32, i32
  }
  func.func @transform_1(%arg0: i32, %arg1: i32, %arg2: i32) -> (i32, i32) {
    %c0_i32 = arith.constant 0 : i32
    return %arg2, %arg1 : i32, i32
  }
  func.func @transform_2(%arg0: i32, %arg1: i32, %arg2: i32) -> (i32, i32) {
    %c0_i32 = arith.constant 0 : i32
    %c0_i32_0 = arith.constant 0 : i32
    return %c0_i32, %arg1 : i32, i32
  }
  func.func @transform_3(%arg0: i32, %arg1: i32, %arg2: i32) -> (i32, i32) {
    %c0_i32 = arith.constant 0 : i32
    return %arg0, %arg1 : i32, i32
  }
}

module attributes {stable_mosaic.version = 11 : i64} {
  func.func @_dense_res_ln_kernel(%arg0: i32, %arg1: i32, %arg2: memref<16x64xbf16, #tpu.memory_space<vmem>>, %arg3: memref<64x32xbf16, #tpu.memory_space<vmem>>, %arg4: memref<1x32xf32, #tpu.memory_space<vmem>>, %arg5: memref<16x32xbf16, #tpu.memory_space<vmem>>, %arg6: memref<1x32xf32, #tpu.memory_space<vmem>>, %arg7: memref<1x32xf32, #tpu.memory_space<vmem>>, %arg8: memref<16x32xbf16, #tpu.memory_space<vmem>>, %arg9: memref<16x32xf32, #tpu.memory_space<vmem>>) attributes {dimension_semantics = [#tpu.dimension_semantics<parallel>, #tpu.dimension_semantics<arbitrary>], iteration_bounds = array<i64: 1, 1>, scalar_prefetch = 0 : i64, scratch_operands = 1 : i64, tpu.core_type = #tpu.core_type<tc>, window_params = [{transform_indices = @transform_0, window_bounds = array<i64: 16, 64>}, {transform_indices = @transform_1, window_bounds = array<i64: 64, 32>}, {pipeline_mode = #tpu.pipeline_mode<synchronous>, transform_indices = @transform_2, window_bounds = array<i64: 1, 32>}, {transform_indices = @transform_3, window_bounds = array<i64: 16, 32>}, {pipeline_mode = #tpu.pipeline_mode<synchronous>, transform_indices = @transform_4, window_bounds = array<i64: 1, 32>}, {pipeline_mode = #tpu.pipeline_mode<synchronous>, transform_indices = @transform_5, window_bounds = array<i64: 1, 32>}, {transform_indices = @transform_6, window_bounds = array<i64: 16, 32>}]} {
    %c0_i32 = arith.constant 0 : i32
    %0 = arith.cmpi eq, %arg1, %c0_i32 : i32
    %1 = arith.extui %0 : i1 to i32
    %c0_i32_0 = arith.constant 0 : i32
    %2 = arith.cmpi ne, %1, %c0_i32_0 : i32
    scf.if %2 {
      %cst_10 = arith.constant 0.000000e+00 : f32
      %12 = vector.broadcast %cst_10 : f32 to vector<16x32xf32>
      %c0_11 = arith.constant 0 : index
      %c0_12 = arith.constant 0 : index
      %13 = vector.load %arg9[%c0_11, %c0_12] : memref<16x32xf32, #tpu.memory_space<vmem>>, vector<16x32xf32>
      tpu.vector_store %arg9[%c0_11, %c0_12], %12 {strides = array<i32>} : memref<16x32xf32, #tpu.memory_space<vmem>>, vector<16x32xf32>,
    } else {
    }
    %c0 = arith.constant 0 : index
    %c0_1 = arith.constant 0 : index
    %3 = vector.load %arg9[%c0, %c0_1] : memref<16x32xf32, #tpu.memory_space<vmem>>, vector<16x32xf32>
    %c0_2 = arith.constant 0 : index
    %c0_3 = arith.constant 0 : index
    %4 = vector.load %arg2[%c0_2, %c0_3] : memref<16x64xbf16, #tpu.memory_space<vmem>>, vector<16x64xbf16>
    %c0_4 = arith.constant 0 : index
    %c0_5 = arith.constant 0 : index
    %5 = vector.load %arg3[%c0_4, %c0_5] : memref<64x32xbf16, #tpu.memory_space<vmem>>, vector<64x32xbf16>
    %cst = arith.constant dense<0.000000e+00> : vector<16x32xf32>
    %6 = tpu.matmul %4, %5, %cst {dimension_numbers = #tpu.dot_dimension_numbers<[1], [0], [0], [1], [0, 0, 1, 1], [], []>} : vector<16x64xbf16>, vector<64x32xbf16>, vector<16x32xf32> -> vector<16x32xf32>
    %7 = arith.addf %3, %6 : vector<16x32xf32>
    %c0_6 = arith.constant 0 : index
    %c0_7 = arith.constant 0 : index
    %8 = vector.load %arg9[%c0_6, %c0_7] : memref<16x32xf32, #tpu.memory_space<vmem>>, vector<16x32xf32>
    tpu.vector_store %arg9[%c0_6, %c0_7], %7 {strides = array<i32>} : memref<16x32xf32, #tpu.memory_space<vmem>>, vector<16x32xf32>,
    %c0_i32_8 = arith.constant 0 : i32
    %9 = arith.cmpi eq, %arg1, %c0_i32_8 : i32
    %10 = arith.extui %9 : i1 to i32
    %c0_i32_9 = arith.constant 0 : i32
    %11 = arith.cmpi ne, %10, %c0_i32_9 : i32
    scf.if %11 {
      %c0_10 = arith.constant 0 : index
      %c0_11 = arith.constant 0 : index
      %12 = vector.load %arg9[%c0_10, %c0_11] : memref<16x32xf32, #tpu.memory_space<vmem>>, vector<16x32xf32>
      %c0_12 = arith.constant 0 : index
      %c0_13 = arith.constant 0 : index
      %13 = vector.load %arg4[%c0_12, %c0_13] : memref<1x32xf32, #tpu.memory_space<vmem>>, vector<1x32xf32>
      %14 = vector.broadcast %13 : vector<1x32xf32> to vector<16x32xf32>
      %15 = arith.addf %12, %14 : vector<16x32xf32>
      %c0_14 = arith.constant 0 : index
      %c0_15 = arith.constant 0 : index
      %16 = vector.load %arg5[%c0_14, %c0_15] : memref<16x32xbf16, #tpu.memory_space<vmem>>, vector<16x32xbf16>
      %17 = arith.extf %16 : vector<16x32xbf16> to vector<16x32xf32>
      %18 = arith.addf %15, %17 : vector<16x32xf32>
      %cst_16 = arith.constant dense<0.000000e+00> : vector<16xf32>
      %19 = vector.multi_reduction <add>, %18, %cst_16 [1] : vector<16x32xf32> to vector<16xf32>
      %20 = vector.shape_cast %19 : vector<16xf32> to vector<16x1xf32>
      %cst_17 = arith.constant 3.200000e+01 : f32
      %21 = vector.broadcast %cst_17 : f32 to vector<16x1xf32>
      %22 = arith.divf %20, %21 : vector<16x1xf32>
      %23 = vector.broadcast %22 : vector<16x1xf32> to vector<16x32xf32>
      %24 = arith.subf %18, %23 : vector<16x32xf32>
      %25 = arith.mulf %24, %24 : vector<16x32xf32>
      %cst_18 = arith.constant dense<0.000000e+00> : vector<16xf32>
      %26 = vector.multi_reduction <add>, %25, %cst_18 [1] : vector<16x32xf32> to vector<16xf32>
      %27 = vector.shape_cast %26 : vector<16xf32> to vector<16x1xf32>
      %cst_19 = arith.constant 3.200000e+01 : f32
      %28 = vector.broadcast %cst_19 : f32 to vector<16x1xf32>
      %29 = arith.divf %27, %28 : vector<16x1xf32>
      %30 = vector.broadcast %22 : vector<16x1xf32> to vector<16x32xf32>
      %31 = arith.subf %18, %30 : vector<16x32xf32>
      %cst_20 = arith.constant 9.99999996E-13 : f32
      %32 = vector.broadcast %cst_20 : f32 to vector<16x1xf32>
      %33 = arith.addf %29, %32 : vector<16x1xf32>
      %34 = math.rsqrt %33 : vector<16x1xf32>
      %35 = vector.broadcast %34 : vector<16x1xf32> to vector<16x32xf32>
      %36 = arith.mulf %31, %35 : vector<16x32xf32>
      %c0_21 = arith.constant 0 : index
      %c0_22 = arith.constant 0 : index
      %37 = vector.load %arg6[%c0_21, %c0_22] : memref<1x32xf32, #tpu.memory_space<vmem>>, vector<1x32xf32>
      %38 = vector.broadcast %37 : vector<1x32xf32> to vector<16x32xf32>
      %39 = arith.mulf %36, %38 : vector<16x32xf32>
      %c0_23 = arith.constant 0 : index
      %c0_24 = arith.constant 0 : index
      %40 = vector.load %arg7[%c0_23, %c0_24] : memref<1x32xf32, #tpu.memory_space<vmem>>, vector<1x32xf32>
      %41 = vector.broadcast %40 : vector<1x32xf32> to vector<16x32xf32>
      %42 = arith.addf %39, %41 : vector<16x32xf32>
      %43 = arith.truncf %42 : vector<16x32xf32> to vector<16x32xbf16>
      %c0_25 = arith.constant 0 : index
      %c0_26 = arith.constant 0 : index
      %44 = vector.load %arg8[%c0_25, %c0_26] : memref<16x32xbf16, #tpu.memory_space<vmem>>, vector<16x32xbf16>
      tpu.vector_store %arg8[%c0_25, %c0_26], %43 {strides = array<i32>} : memref<16x32xbf16, #tpu.memory_space<vmem>>, vector<16x32xbf16>,
    } else {
    }
    return
  }
  func.func @transform_0(%arg0: i32, %arg1: i32) -> (i32, i32) {
    %c0_i32 = arith.constant 0 : i32
    return %arg0, %arg1 : i32, i32
  }
  func.func @transform_1(%arg0: i32, %arg1: i32) -> (i32, i32) {
    %c0_i32 = arith.constant 0 : i32
    %c0_i32_0 = arith.constant 0 : i32
    return %arg1, %c0_i32 : i32, i32
  }
  func.func @transform_2(%arg0: i32, %arg1: i32) -> (i32, i32) {
    %c0_i32 = arith.constant 0 : i32
    %c0_i32_0 = arith.constant 0 : i32
    %c0_i32_1 = arith.constant 0 : i32
    return %c0_i32, %c0_i32_0 : i32, i32
  }
  func.func @transform_3(%arg0: i32, %arg1: i32) -> (i32, i32) {
    %c0_i32 = arith.constant 0 : i32
    %c0_i32_0 = arith.constant 0 : i32
    return %arg0, %c0_i32 : i32, i32
  }
  func.func @transform_4(%arg0: i32, %arg1: i32) -> (i32, i32) {
    %c0_i32 = arith.constant 0 : i32
    %c0_i32_0 = arith.constant 0 : i32
    %c0_i32_1 = arith.constant 0 : i32
    return %c0_i32, %c0_i32_0 : i32, i32
  }
  func.func @transform_5(%arg0: i32, %arg1: i32) -> (i32, i32) {
    %c0_i32 = arith.constant 0 : i32
    %c0_i32_0 = arith.constant 0 : i32
    %c0_i32_1 = arith.constant 0 : i32
    return %c0_i32, %c0_i32_0 : i32, i32
  }
  func.func @transform_6(%arg0: i32, %arg1: i32) -> (i32, i32) {
    %c0_i32 = arith.constant 0 : i32
    %c0_i32_0 = arith.constant 0 : i32
    return %arg0, %c0_i32 : i32, i32
  }
}

</mosaic_0001>

<bundles_post_ra>
// kernel: bert_forward.11
= control target key start
LH: loop header
LB: loop body
LE: loop exit
PB: predicated region body
PF: predicated region fallthrough
CT: control target
= control target key end

     0   :  { %vm16_vm0 = vcmask 261120   ;;  %vm70_vm1 = vcmask 257024   ;;  %s129_s0 = inlined_call_operand.vmem [shape: f32[16,32], index: 0, kind: input, shape index: {}]   ;;  %s130_s1 = inlined_call_operand.vmem [shape: f32[1,32], index: 1, kind: input, shape index: {}]   ;;  %s131_s2 = inlined_call_operand.vmem [shape: f32[1,32], index: 2, kind: input, shape index: {}]   ;;  %s132_s3 = inlined_call_operand.vmem [shape: bf16[16,32], index: 3, kind: output, shape index: {}]  }
   0x1   :  { %v14_v0 = vld [vmem:[%s129_s0] sm:$0xff]  ;;  %v15_v1 = vld [vmem:[%s129_s0 + $0x8] sm:$0xff] }
   0x2   :  { %v17_v2 = vsel %vm16_vm0, %v14_v0, 0.0  ;;  %v20_v3 = vsel %vm16_vm0, %v15_v1, 0.0  ;;  %v77_v21 = vld [vmem:[%s130_s1] ss:$0 sm:$0xff] }
   0x3   :  { %18 = vadd.xlane.f32.xlu0 %v17_v2  ;;  %v78_v23 = vld [vmem:[%s131_s2] ss:$0 sm:$0xff] }
   0x7   :  { %21 = vadd.xlane.f32.xlu0 %v20_v3 }
  0x8c   :  { %v19_v4 = vpop.xlane.xlu0 %18 }
  0x8d   :  { %v24_v5 = vmul.f32 0.03125, %v19_v4 }
  0x8f   :  { %v26_v6 = vsub.f32 %v14_v0, %v24_v5 }
  0x90   :  { %v22_v7 = vpop.xlane.xlu0 %21 }
  0x91   :  { %v25_v8 = vmul.f32 0.03125, %v22_v7  ;;  %v28_v9 = vmul.f32 %v26_v6, %v26_v6 }
  0x93   :  { %v27_v10 = vsub.f32 %v15_v1, %v25_v8  ;;  %v30_v11 = vsel %vm16_vm0, %v28_v9, 0.0 }
  0x94   :  { %31 = vadd.xlane.f32.xlu1 %v30_v11 }
  0x95   :  { %v29_v12 = vmul.f32 %v27_v10, %v27_v10 }
  0x97   :  { %v33_v13 = vsel %vm16_vm0, %v29_v12, 0.0 }
  0x98   :  { %34 = vadd.xlane.f32.xlu1 %v33_v13 }
 0x11d   :  { %v32_v14 = vpop.xlane.xlu1 %31 }
 0x11e   :  { %v36_v15 = vmul.f32 0.03125, %v32_v14 }
 0x120   :  { %v38_v16 = vadd.f32 1e-12, %v36_v15 }
 0x121   :  { %v35_v17 = vpop.xlane.xlu1 %34 }
 0x122   :  { %83 = vrsqrt.f32 %v38_v16  ;;  %v37_v18 = vmul.f32 0.03125, %v35_v17 }
 0x124   :  { %v39_v19 = vadd.f32 1e-12, %v37_v18 }
 0x126   :  { %85 = vrsqrt.f32 %v39_v19 }
 0x12f   :  { %v84_v20 = vpop.eup %83 }
 0x130   :  { %v42_v22 = vmul.f32 %v84_v20, %v26_v6 }
 0x132   :  { %v51_v24 = vmul.f32 %v77_v21, %v42_v22 }
 0x133   :  { %v86_v25 = vpop.eup %85 }
 0x134   :  { %v60_v26 = vadd.f32 %v78_v23, %v51_v24  ;;  %v43_v27 = vmul.f32 %v86_v25, %v27_v10 }
 0x136   :  { %v81_v28 = vpack.c.bf16 %v60_v26, %v60_v26  ;;  %v52_v29 = vmul.f32 %v77_v21, %v43_v27 }
 0x138   :  { %71 = vst.msk [vmem:[%s132_s3] sm:$0xf] %vm70_vm1, %v81_v28  ;;  %v61_v30 = vadd.f32 %v78_v23, %v52_v29 }
 0x13a   :  { %v82_v31 = vpack.c.bf16 %v61_v30, %v61_v30 }
 0x13c   :  { %72 = vst.msk [vmem:[%s132_s3 + $0x4] sm:$0xf] %vm70_vm1, %v82_v31 }

// kernel: bert_forward.12
= control target key start
LH: loop header
LB: loop body
LE: loop exit
PB: predicated region body
PF: predicated region fallthrough
CT: control target
= control target key end

     0   :  { %vm19_vm0 = vcmask 785408   ;;  %v151_v0 = vmov 0.0   ;;  %vm152_vm1 = vmmov 0   ;;  %vm47_vm2 = vcmask 261120   ;;  %s195_s1 = inlined_call_operand.vmem [shape: bf16[32,96], index: 1, kind: input, shape index: {}]   ;;  %s196_s0 = inlined_call_operand.vmem [shape: bf16[16,32], index: 0, kind: input, shape index: {}]   ;;  %s197_s2 = inlined_call_operand.vmem [shape: f32[1,96], index: 2, kind: input, shape index: {}]   ;;  %s198_s3 = inlined_call_operand.vmem [shape: bf16[16,96], index: 3, kind: output, shape index: {}]  }
   0x1   :  { %138 = vmatprep.subr.bf16.mxu0 %v151_v0  ;;  %v148_v1 = vld [vmem:[%s195_s1 + $0x8] sm:$0xff]   ;;  %142 = vmatprep.mubr.msk.bf16.mxu0 %vm152_vm1, %v151_v0  ;;  %20 = vst.msk [vmem:[#allocation2] sm:$0xff] %vm19_vm0, %v151_v0  ;;  %21 = vst.msk [vmem:[#allocation2 + $0x8] sm:$0xff] %vm19_vm0, %v151_v0  ;;  %v149_v2 = vld [vmem:[%s195_s1] sm:$0xff]   ;;  %vm119_vm3 = vcmask 781312  }
   0x2   :  { %139 = vmatpush3.bf16.msra.mxu0 %v148_v1  ;;  %v150_v3 = vld [vmem:[%s196_s0] sm:$0xff]  }
   0x3   :  { %140 = vmatprep.subr.bf16.mxu0 %v151_v0  ;;  %v130_v12 = vld [vmem:[%s197_s2] ss:$0 sm:$0xff] }
   0x6   :  { %141 = vmatpush3.bf16.msra.mxu0 %v149_v2 }
   0x8   :  { %v22_v4 = vld [vmem:[#allocation2] sm:$0xff]  ;;  %v23_v8 = vld [vmem:[#allocation2 + $0x8] sm:$0xff] }
   0x9   :  { %143 = vmatmul.mubr.msk.bf16.vlgmr.msra.gmra.mxu0 %vm47_vm2, %v150_v3 }
  0xc9   :  { %v85_v5 = vpop.f32.mrf.mxu0 }
  0xca   :  { %v92_v6 = vadd.f32 %v85_v5, %v22_v4 }
  0xcb   :  { %v144_v7 = vpop.f32.mrf.mxu0 }
  0xcc   :  { %95 = vst.msk [vmem:[#allocation2] sm:$0xff] %vm19_vm0, %v92_v6 }
  0xcd   :  { %v88_v9 = vpop.f32.mrf.mxu0 }
  0xce   :  { %v93_v10 = vadd.f32 %v88_v9, %v23_v8 }
  0xcf   :  { %v145_v11 = vpop.f32.mrf.mxu0 }
  0xd0   :  { %96 = vst.msk [vmem:[#allocation2 + $0x8] sm:$0xff] %vm19_vm0, %v93_v10 }
  0xd3   :  { %v100_v13 = vld [vmem:[#allocation2] sm:$0xff] }
  0xd4   :  { %v109_v14 = vadd.f32 %v130_v12, %v100_v13 }
  0xd6   :  { %v133_v15 = vpack.c.bf16 %v109_v14, %v109_v14 }
  0xd7   :  { %v101_v16 = vld [vmem:[#allocation2 + $0x8] sm:$0xff] }
  0xd8   :  { %120 = vst.msk [vmem:[%s198_s3] sm:$0xf] %vm119_vm3, %v133_v15  ;;  %v110_v17 = vadd.f32 %v130_v12, %v101_v16 }
  0xda   :  { %v134_v18 = vpack.c.bf16 %v110_v17, %v110_v17 }
  0xdc   :  { %121 = vst.msk [vmem:[%s198_s3 + $0x4] sm:$0xf] %vm119_vm3, %v134_v18 }

// kernel: bert_forward.13
= control target key start
LH: loop header
LB: loop body
LE: loop exit
PB: predicated region body
PF: predicated region fallthrough
CT: control target
= control target key end

     0   :  { %s748_s15 = smov 0   ;;  %s750_s16 = smov 0   ;;  %s819_s0 = inlined_call_operand.vmem [shape: bf16[2,4,8,8], index: 0, kind: input, shape index: {}]   ;;  %s820_s1 = inlined_call_operand.vmem [shape: bf16[2,4,8,8], index: 1, kind: input, shape index: {}]   ;;  %s821_s2 = inlined_call_operand.vmem [shape: bf16[2,4,8,8], index: 2, kind: input, shape index: {}]   ;;  %s822_s3 = inlined_call_operand.vmem [shape: f32[2,1,1,8], index: 3, kind: input, shape index: {}]   ;;  %s823_s4 = inlined_call_operand.vmem [shape: bf16[2,4,8,8], index: 4, kind: output, shape index: {}]  }
   0x1   :  { %s752_s17 = smov 0   ;;  %s754_s18 = smov 0  }
   0x2   :  { %s756_s19 = smov 0  }
   0x3 LB: > { %s29_s20 = sadd.s32 1, %s711_s17  ;;  %s33_s21 = sadd.s32 1, %s715_s18  ;;  %s719_s19 = sphi %s756_s19, %s14_s19   ;;  %s715_s18 = sphi %s754_s18, %s827_s18   ;;  %s711_s17 = sphi %s752_s17, %s826_s17   ;;  %s707_s16 = sphi %s750_s16, %s825_s16   ;;  %s703_s15 = sphi %s748_s15, %s824_s15  }
   0x4   : > { %p31_p0 = scmp.ge.s32.totalorder %s29_s20, 4  ;;  %p605_p1 = scmp.ge.s32.totalorder %s719_s19, 1 }
   0x5   : > { %p233_p2 = scmp.lt.s32.totalorder %s719_s19, 9 }
   0x6   : > { %s829_s20 = smov (%p31_p0, %s29_s20), 0  ;;  %s831_s21 = smov (!%p31_p0, %s33_s21), %s715_s18 }
   0x7   : > { %p234_p3 = pnand %p605_p1, %p233_p2  ;;  %p35_p4 = scmp.ge.s32.totalorder %s831_s21, 2 }
   0x8   : > { %p290_p5 = scmp.lt.s32.totalorder (!%p234_p3), %s707_s16, 1  ;;  %p292_p6 = scmp.lt.s32.totalorder (!%p234_p3), %s703_s15, 3 }
   0x9   : > { %s833_s21 = smov (%p35_p4, %s831_s21), 0  ;;  %237 = sbr.rel (%p234_p3) target bundleno = 736 (0x2e0), region = 36 }
   0xe   : > { %v721_v0 = vmov 0.0   ;;  %vm722_vm0 = vmmov 0   ;;  %s835_s16 = smov (!%p290_p5, %s707_s16), 1  ;;  %s837_s15 = smov (!%p292_p6, %s703_s15), 3  ;;  %vm345_vm1 = vcmask 64512   ;;  %vm407_vm2 = vcmask 1043456  }
   0xf   : > { %623 = vmatprep.subr.bf16.mxu0 %v721_v0  ;;  %625 = vmatprep.mubr.msk.bf16.mxu0 %vm722_vm0, %v721_v0  ;;  %s606_s22 = sshll.u32 %s835_s16, 2  ;;  %s319_s7 = scalar_lea.vmem %s822_s3, %s835_s16  ;;  %vm452_vm3 = vcmask 60416  }
  0x10   : > { %629 = vmatprep.subr.bf16.mxu1 %v721_v0  ;;  %631 = vmatprep.mubr.msk.bf16.mxu1 %vm722_vm0, %v721_v0  ;;  %s298_s23 = sadd.s32 %s606_s22, %s837_s15  ;;  %v614_v7 = vld [vmem:[%s319_s7] ss:$0 sm:$0xff] }
  0x11   : > { %s778_s24 = sshll.u32 %s298_s23, 2 }
  0x12   : > { %s308_s27 = scalar_lea.vmem %s820_s1, %s778_s24  ;;  %s300_s30 = scalar_lea.vmem %s819_s0, %s778_s24 }
  0x13   : > { %v336_v1 = vld [vmem:[%s308_s27] sm:$0xf]  ;;  %s316_s10 = scalar_lea.vmem %s821_s2, %s778_s24  ;;  %s330_s13 = scalar_lea.vmem %s823_s4, %s778_s24 }
  0x14   : > { %v332_v2 = vld [vmem:[%s300_s30] sm:$0xf]  ;;  %v350_v3 = vsel %vm345_vm1, %v336_v1, 0 }
  0x15   : > { %v333_v4 = vunpack.c.l.bf16 %v332_v2  ;;  %624 = vmatpush3.bf16.xpose.msra.mxu0 %v350_v3  ;;  %v337_v19 = vld [vmem:[%s316_s10] sm:$0xf] }
  0x16   : > { %v409_v20 = vsel %vm407_vm2, %v337_v19, 0 }
  0x17   : > { %v334_v5 = vmul.f32 0.35355338, %v333_v4  ;;  %630 = vmatpush3.bf16.msra.mxu1 %v409_v20 }
  0x19   : > { %v335_v6 = vpack.c.bf16 %v334_v5, %v334_v5 }
  0x1c   : > { %626 = vmatmul.mubr.msk.bf16.vlgmr.msra.gmra.mxu0 %vm345_vm1, %v335_v6 }
  0xdc   : > { %v386_v8 = vpop.f32.mrf.mxu0 }
  0xdd   : > { %v387_v9 = vadd.f32 %v614_v7, %v386_v8 }
  0xde   : > { %v627_v10 = vpop.f32.mrf.mxu0 }
  0xdf   : > { %v392_v11 = vsel %vm345_vm1, %v387_v9, -inf }
  0xe0   : > { %393 = vmax.xlane.f32.xlu0 %v392_v11  ;;  %v389_v12 = vpop.f32.mrf.mxu0 }
  0xe2   : > { %v628_v13 = vpop.f32.mrf.mxu0 }
 0x169   : > { %v394_v14 = vpop.xlane.xlu0 %393 }
 0x16a   : > { %v395_v15 = vsub.f32 %v387_v9, %v394_v14 }
 0x16c   : > { %v396_v16 = vmul.f32 1.442695, %v395_v15 }
 0x16e   : > { %677 = vpow2.f32 %v396_v16 }
 0x17b   : > { %v678_v17 = vpop.eup %677 }
 0x17c   : > { %v398_v18 = vsel %vm345_vm1, %v678_v17, 0.0 }
 0x17d   : > { %399 = vadd.xlane.f32.xlu0 %v398_v18 }
 0x206   : > { %v400_v21 = vpop.xlane.xlu0 %399 }
 0x207   : > { %679 = vrcp.f32 %v400_v21 }
 0x214   : > { %v680_v22 = vpop.eup %679 }
 0x215   : > { %v402_v23 = vmul.f32 %v680_v22, %v678_v17 }
 0x217   : > { %v403_v24 = vpack.c.bf16 %v402_v23, %v402_v23 }
 0x219   : > { %632 = vmatmul.mubr.msk.bf16.vlgmr.msra.gmra.mxu1 %vm345_vm1, %v403_v24 }
 0x2d9   : > { %v445_v25 = vpop.f32.mrf.mxu1 }
 0x2da   : > { %v451_v26 = vpack.c.bf16 %v445_v25, %v445_v25 }
 0x2db   : > { %v633_v27 = vpop.f32.mrf.mxu1 }
 0x2dc   : > { %453 = vst.msk [vmem:[%s330_s13] sm:$0xf] %vm452_vm3, %v451_v26 }
 0x2dd   : > { %v448_v28 = vpop.f32.mrf.mxu1 }
 0x2df   : > { %v634_v29 = vpop.f32.mrf.mxu1 }
 0x2e0 PF: > { %s14_s19 = sadd.s32 1, %s719_s19   ;;  %s824_s15 = smov %s711_s17 }
 0x2e1   : > { %p11_p7 = scmp.ge.s32.totalorder %s14_s19, 10   ;;  %s825_s16 = smov %s715_s18 }
 0x2e2   : > { %s826_s17 = smov %s829_s20  ;;  %s827_s18 = smov %s833_s21 }
 0x2e3   :  { %13 = sbr.rel (!%p11_p7) target bundleno = 3 (0x3), region = 75 }

// kernel: bert_forward.14
= control target key start
LH: loop header
LB: loop body
LE: loop exit
PB: predicated region body
PF: predicated region fallthrough
CT: control target
= control target key end

     0   :  { %vm28_vm0 = vcmask 261120   ;;  %v220_v0 = vmov 0.0   ;;  %vm221_vm1 = vmmov 0   ;;  %vm178_vm2 = vcmask 257024   ;;  %s293_s1 = inlined_call_operand.vmem [shape: bf16[32,32], index: 1, kind: input, shape index: {}]   ;;  %s294_s0 = inlined_call_operand.vmem [shape: bf16[16,32], index: 0, kind: input, shape index: {}]   ;;  %s295_s3 = inlined_call_operand.vmem [shape: bf16[16,32], index: 3, kind: input, shape index: {}]   ;;  %s296_s2 = inlined_call_operand.vmem [shape: f32[1,32], index: 2, kind: input, shape index: {}]   ;;  %s297_s4 = inlined_call_operand.vmem [shape: f32[1,32], index: 4, kind: input, shape index: {}]   ;;  %s298_s5 = inlined_call_operand.vmem [shape: f32[1,32], index: 5, kind: input, shape index: {}]   ;;  %s299_s6 = inlined_call_operand.vmem [shape: bf16[16,32], index: 6, kind: output, shape index: {}]  }
   0x1   :  { %203 = vmatprep.subr.bf16.mxu0 %v220_v0  ;;  %v213_v1 = vld [vmem:[%s293_s1 + $0x8] sm:$0xff]   ;;  %207 = vmatprep.mubr.msk.bf16.mxu0 %vm221_vm1, %v220_v0  ;;  %29 = vst.msk [vmem:[#allocation2] sm:$0xff] %vm28_vm0, %v220_v0  ;;  %30 = vst.msk [vmem:[#allocation2 + $0x8] sm:$0xff] %vm28_vm0, %v220_v0  ;;  %v214_v2 = vld [vmem:[%s293_s1] sm:$0xff]  }
   0x2   :  { %204 = vmatpush3.bf16.msra.mxu0 %v213_v1  ;;  %v215_v3 = vld [vmem:[%s294_s0] sm:$0xff]  }
   0x3   :  { %205 = vmatprep.subr.bf16.mxu0 %v220_v0  ;;  %v197_v12 = vld [vmem:[%s295_s3] sm:$0xff]  }
   0x4   :  { %v189_v13 = vld [vmem:[%s296_s2] ss:$0 sm:$0xff]  ;;  %v198_v14 = vunpack.c.l.bf16 %v197_v12  ;;  %v199_v18 = vunpack.c.h.bf16 %v197_v12 }
   0x5   :  { %v190_v41 = vld [vmem:[%s297_s4] ss:$0 sm:$0xff] }
   0x6   :  { %206 = vmatpush3.bf16.msra.mxu0 %v214_v2  ;;  %v191_v43 = vld [vmem:[%s298_s5] ss:$0 sm:$0xff] }
   0x8   :  { %v31_v4 = vld [vmem:[#allocation2] sm:$0xff]  ;;  %v32_v8 = vld [vmem:[#allocation2 + $0x8] sm:$0xff] }
   0x9   :  { %208 = vmatmul.mubr.msk.bf16.vlgmr.msra.gmra.mxu0 %vm28_vm0, %v215_v3 }
  0xc9   :  { %v94_v5 = vpop.f32.mrf.mxu0 }
  0xca   :  { %v101_v6 = vadd.f32 %v94_v5, %v31_v4 }
  0xcb   :  { %v209_v7 = vpop.f32.mrf.mxu0 }
  0xcc   :  { %103 = vst.msk [vmem:[#allocation2] sm:$0xff] %vm28_vm0, %v101_v6 }
  0xcd   :  { %v97_v9 = vpop.f32.mrf.mxu0 }
  0xce   :  { %v102_v10 = vadd.f32 %v97_v9, %v32_v8 }
  0xcf   :  { %v210_v11 = vpop.f32.mrf.mxu0 }
  0xd0   :  { %104 = vst.msk [vmem:[#allocation2 + $0x8] sm:$0xff] %vm28_vm0, %v102_v10 }
  0xd3   :  { %v108_v15 = vld [vmem:[#allocation2] sm:$0xff] }
  0xd4   :  { %v117_v16 = vadd.f32 %v189_v13, %v108_v15 }
  0xd6   :  { %v123_v17 = vadd.f32 %v198_v14, %v117_v16 }
  0xd7   :  { %v109_v19 = vld [vmem:[#allocation2 + $0x8] sm:$0xff] }
  0xd8   :  { %v125_v20 = vsel %vm28_vm0, %v123_v17, 0.0  ;;  %v118_v21 = vadd.f32 %v189_v13, %v109_v19 }
  0xd9   :  { %126 = vadd.xlane.f32.xlu0 %v125_v20 }
  0xda   :  { %v124_v22 = vadd.f32 %v199_v18, %v118_v21 }
  0xdc   :  { %v128_v23 = vsel %vm28_vm0, %v124_v22, 0.0 }
  0xdd   :  { %129 = vadd.xlane.f32.xlu0 %v128_v23 }
 0x162   :  { %v127_v24 = vpop.xlane.xlu0 %126 }
 0x163   :  { %v132_v25 = vmul.f32 0.03125, %v127_v24 }
 0x165   :  { %v134_v26 = vsub.f32 %v123_v17, %v132_v25 }
 0x166   :  { %v130_v27 = vpop.xlane.xlu0 %129 }
 0x167   :  { %v133_v28 = vmul.f32 0.03125, %v130_v27  ;;  %v136_v29 = vmul.f32 %v134_v26, %v134_v26 }
 0x169   :  { %v135_v30 = vsub.f32 %v124_v22, %v133_v28  ;;  %v138_v31 = vsel %vm28_vm0, %v136_v29, 0.0 }
 0x16a   :  { %139 = vadd.xlane.f32.xlu1 %v138_v31 }
 0x16b   :  { %v137_v32 = vmul.f32 %v135_v30, %v135_v30 }
 0x16d   :  { %v141_v33 = vsel %vm28_vm0, %v137_v32, 0.0 }
 0x16e   :  { %142 = vadd.xlane.f32.xlu1 %v141_v33 }
 0x1f3   :  { %v140_v34 = vpop.xlane.xlu1 %139 }
 0x1f4   :  { %v144_v35 = vmul.f32 0.03125, %v140_v34 }
 0x1f6   :  { %v146_v36 = vadd.f32 1e-12, %v144_v35 }
 0x1f7   :  { %v143_v37 = vpop.xlane.xlu1 %142 }
 0x1f8   :  { %216 = vrsqrt.f32 %v146_v36  ;;  %v145_v38 = vmul.f32 0.03125, %v143_v37 }
 0x1fa   :  { %v147_v39 = vadd.f32 1e-12, %v145_v38 }
 0x1fc   :  { %218 = vrsqrt.f32 %v147_v39 }
 0x205   :  { %v217_v40 = vpop.eup %216 }
 0x206   :  { %v150_v42 = vmul.f32 %v217_v40, %v134_v26 }
 0x208   :  { %v159_v44 = vmul.f32 %v190_v41, %v150_v42 }
 0x209   :  { %v219_v45 = vpop.eup %218 }
 0x20a   :  { %v168_v46 = vadd.f32 %v191_v43, %v159_v44  ;;  %v151_v47 = vmul.f32 %v219_v45, %v135_v30 }
 0x20c   :  { %v194_v48 = vpack.c.bf16 %v168_v46, %v168_v46  ;;  %v160_v49 = vmul.f32 %v190_v41, %v151_v47 }
 0x20e   :  { %179 = vst.msk [vmem:[%s299_s6] sm:$0xf] %vm178_vm2, %v194_v48  ;;  %v169_v50 = vadd.f32 %v191_v43, %v160_v49 }
 0x210   :  { %v195_v51 = vpack.c.bf16 %v169_v50, %v169_v50 }
 0x212   :  { %180 = vst.msk [vmem:[%s299_s6 + $0x4] sm:$0xf] %vm178_vm2, %v195_v51 }

// kernel: bert_forward.15
= control target key start
LH: loop header
LB: loop body
LE: loop exit
PB: predicated region body
PF: predicated region fallthrough
CT: control target
= control target key end

     0   :  { %vm19_vm0 = vcmask 523264   ;;  %v165_v0 = vmov 0.0   ;;  %vm166_vm1 = vmmov 0   ;;  %vm47_vm2 = vcmask 261120   ;;  %s209_s1 = inlined_call_operand.vmem [shape: bf16[32,64], index: 1, kind: input, shape index: {}]   ;;  %s210_s0 = inlined_call_operand.vmem [shape: bf16[16,32], index: 0, kind: input, shape index: {}]   ;;  %s211_s2 = inlined_call_operand.vmem [shape: f32[1,64], index: 2, kind: input, shape index: {}]   ;;  %s212_s3 = inlined_call_operand.vmem [shape: bf16[16,64], index: 3, kind: output, shape index: {}]  }
   0x1   :  { %148 = vmatprep.subr.bf16.mxu0 %v165_v0  ;;  %v158_v1 = vld [vmem:[%s209_s1 + $0x8] sm:$0xff]   ;;  %152 = vmatprep.mubr.msk.bf16.mxu0 %vm166_vm1, %v165_v0  ;;  %20 = vst.msk [vmem:[#allocation2] sm:$0xff] %vm19_vm0, %v165_v0  ;;  %21 = vst.msk [vmem:[#allocation2 + $0x8] sm:$0xff] %vm19_vm0, %v165_v0  ;;  %v159_v2 = vld [vmem:[%s209_s1] sm:$0xff]   ;;  %vm129_vm3 = vcmask 519168  }
   0x2   :  { %149 = vmatpush3.bf16.msra.mxu0 %v158_v1  ;;  %v160_v3 = vld [vmem:[%s210_s0] sm:$0xff]  }
   0x3   :  { %150 = vmatprep.subr.bf16.mxu0 %v165_v0  ;;  %v140_v12 = vld [vmem:[%s211_s2] ss:$0 sm:$0xff] }
   0x6   :  { %151 = vmatpush3.bf16.msra.mxu0 %v159_v2 }
   0x8   :  { %v22_v4 = vld [vmem:[#allocation2] sm:$0xff]  ;;  %v23_v8 = vld [vmem:[#allocation2 + $0x8] sm:$0xff] }
   0x9   :  { %153 = vmatmul.mubr.msk.bf16.vlgmr.msra.gmra.mxu0 %vm47_vm2, %v160_v3 }
  0xc9   :  { %v85_v5 = vpop.f32.mrf.mxu0 }
  0xca   :  { %v92_v6 = vadd.f32 %v85_v5, %v22_v4 }
  0xcb   :  { %v154_v7 = vpop.f32.mrf.mxu0 }
  0xcc   :  { %95 = vst.msk [vmem:[#allocation2] sm:$0xff] %vm19_vm0, %v92_v6 }
  0xcd   :  { %v88_v9 = vpop.f32.mrf.mxu0 }
  0xce   :  { %v93_v10 = vadd.f32 %v88_v9, %v23_v8 }
  0xcf   :  { %v155_v11 = vpop.f32.mrf.mxu0 }
  0xd0   :  { %96 = vst.msk [vmem:[#allocation2 + $0x8] sm:$0xff] %vm19_vm0, %v93_v10 }
  0xd3   :  { %v100_v13 = vld [vmem:[#allocation2] sm:$0xff] }
  0xd4   :  { %v109_v14 = vadd.f32 %v140_v12, %v100_v13 }
  0xd6   :  { %v113_v15 = vmul.f32 0.70710677, %v109_v14  ;;  %v111_v20 = vmul.f32 0.5, %v109_v14 }
  0xd7   :  { %v101_v16 = vld [vmem:[#allocation2 + $0x8] sm:$0xff] }
  0xd8   :  { %161 = verf.f32 %v113_v15  ;;  %v110_v17 = vadd.f32 %v140_v12, %v101_v16 }
  0xda   :  { %v114_v18 = vmul.f32 0.70710677, %v110_v17  ;;  %v112_v25 = vmul.f32 0.5, %v110_v17 }
  0xdc   :  { %163 = verf.f32 %v114_v18 }
  0xe5   :  { %v162_v19 = vpop.eup %161 }
  0xe6   :  { %v117_v21 = vadd.f32 1.0, %v162_v19 }
  0xe8   :  { %v119_v22 = vmul.f32 %v117_v21, %v111_v20 }
  0xe9   :  { %v164_v23 = vpop.eup %163 }
  0xea   :  { %v143_v24 = vpack.c.bf16 %v119_v22, %v119_v22  ;;  %v118_v26 = vadd.f32 1.0, %v164_v23 }
  0xec   :  { %130 = vst.msk [vmem:[%s212_s3] sm:$0xf] %vm129_vm3, %v143_v24  ;;  %v120_v27 = vmul.f32 %v118_v26, %v112_v25 }
  0xee   :  { %v144_v28 = vpack.c.bf16 %v120_v27, %v120_v27 }
  0xf0   :  { %131 = vst.msk [vmem:[%s212_s3 + $0x4] sm:$0xf] %vm129_vm3, %v144_v28 }

// kernel: bert_forward.16
= control target key start
LH: loop header
LB: loop body
LE: loop exit
PB: predicated region body
PF: predicated region fallthrough
CT: control target
= control target key end

     0   :  { %vm28_vm0 = vcmask 261120   ;;  %v247_v0 = vmov 0.0   ;;  %vm248_vm1 = vmmov 0   ;;  %vm72_vm2 = vcmask 523264   ;;  %s325_s1 = inlined_call_operand.vmem [shape: bf16[64,32], index: 1, kind: input, shape index: {}]   ;;  %s326_s0 = inlined_call_operand.vmem [shape: bf16[16,64], index: 0, kind: input, shape index: {}]   ;;  %s327_s3 = inlined_call_operand.vmem [shape: bf16[16,32], index: 3, kind: input, shape index: {}]   ;;  %s328_s2 = inlined_call_operand.vmem [shape: f32[1,32], index: 2, kind: input, shape index: {}]   ;;  %s329_s4 = inlined_call_operand.vmem [shape: f32[1,32], index: 4, kind: input, shape index: {}]   ;;  %s330_s5 = inlined_call_operand.vmem [shape: f32[1,32], index: 5, kind: input, shape index: {}]   ;;  %s331_s6 = inlined_call_operand.vmem [shape: bf16[16,32], index: 6, kind: output, shape index: {}]  }
   0x1   :  { %224 = vmatprep.subr.bf16.mxu0 %v247_v0  ;;  %v238_v1 = vld [vmem:[%s325_s1 + $0x18] sm:$0xff]   ;;  %232 = vmatprep.mubr.msk.bf16.mxu0 %vm248_vm1, %v247_v0  ;;  %29 = vst.msk [vmem:[#allocation2] sm:$0xff] %vm28_vm0, %v247_v0  ;;  %30 = vst.msk [vmem:[#allocation2 + $0x8] sm:$0xff] %vm28_vm0, %v247_v0  ;;  %v239_v2 = vld [vmem:[%s325_s1 + $0x10] sm:$0xff]   ;;  %vm195_vm3 = vcmask 257024  }
   0x2   :  { %225 = vmatpush3.bf16.msra.mxu0 %v238_v1  ;;  %v240_v3 = vld [vmem:[%s325_s1 + $0x8] sm:$0xff]   ;;  %v241_v4 = vld [vmem:[%s325_s1] sm:$0xff]  }
   0x3   :  { %226 = vmatprep.subr.bf16.mxu0 %v247_v0  ;;  %v242_v5 = vld [vmem:[%s326_s0] sm:$0xff]  }
   0x4   :  { %v216_v14 = vld [vmem:[%s327_s3] sm:$0xff]  }
   0x5   :  { %v208_v15 = vld [vmem:[%s328_s2] ss:$0 sm:$0xff]  ;;  %v217_v16 = vunpack.c.l.bf16 %v216_v14  ;;  %v218_v20 = vunpack.c.h.bf16 %v216_v14 }
   0x6   :  { %227 = vmatpush3.bf16.msra.mxu0 %v239_v2  ;;  %v209_v43 = vld [vmem:[%s329_s4] ss:$0 sm:$0xff] }
   0x7   :  { %228 = vmatprep.subr.bf16.mxu0 %v247_v0  ;;  %v210_v45 = vld [vmem:[%s330_s5] ss:$0 sm:$0xff] }
   0x8   :  { %v31_v6 = vld [vmem:[#allocation2] sm:$0xff]  ;;  %v32_v10 = vld [vmem:[#allocation2 + $0x8] sm:$0xff] }
   0xa   :  { %229 = vmatpush3.bf16.msra.mxu0 %v240_v3 }
   0xb   :  { %230 = vmatprep.subr.bf16.mxu0 %v247_v0 }
   0xe   :  { %231 = vmatpush3.bf16.msra.mxu0 %v241_v4 }
  0x11   :  { %233 = vmatmul.mubr.msk.bf16.vlgmr.msra.gmra.mxu0 %vm72_vm2, %v242_v5 }
  0xd1   :  { %v110_v7 = vpop.f32.mrf.mxu0 }
  0xd2   :  { %v117_v8 = vadd.f32 %v110_v7, %v31_v6 }
  0xd3   :  { %v234_v9 = vpop.f32.mrf.mxu0 }
  0xd4   :  { %120 = vst.msk [vmem:[#allocation2] sm:$0xff] %vm28_vm0, %v117_v8 }
  0xd5   :  { %v113_v11 = vpop.f32.mrf.mxu0 }
  0xd6   :  { %v118_v12 = vadd.f32 %v113_v11, %v32_v10 }
  0xd7   :  { %v235_v13 = vpop.f32.mrf.mxu0 }
  0xd8   :  { %121 = vst.msk [vmem:[#allocation2 + $0x8] sm:$0xff] %vm28_vm0, %v118_v12 }
  0xdb   :  { %v125_v17 = vld [vmem:[#allocation2] sm:$0xff] }
  0xdc   :  { %v134_v18 = vadd.f32 %v208_v15, %v125_v17 }
  0xde   :  { %v140_v19 = vadd.f32 %v217_v16, %v134_v18 }
  0xdf   :  { %v126_v21 = vld [vmem:[#allocation2 + $0x8] sm:$0xff] }
  0xe0   :  { %v142_v22 = vsel %vm28_vm0, %v140_v19, 0.0  ;;  %v135_v23 = vadd.f32 %v208_v15, %v126_v21 }
  0xe1   :  { %143 = vadd.xlane.f32.xlu0 %v142_v22 }
  0xe2   :  { %v141_v24 = vadd.f32 %v218_v20, %v135_v23 }
  0xe4   :  { %v145_v25 = vsel %vm28_vm0, %v141_v24, 0.0 }
  0xe5   :  { %146 = vadd.xlane.f32.xlu0 %v145_v25 }
 0x16a   :  { %v144_v26 = vpop.xlane.xlu0 %143 }
 0x16b   :  { %v149_v27 = vmul.f32 0.03125, %v144_v26 }
 0x16d   :  { %v151_v28 = vsub.f32 %v140_v19, %v149_v27 }
 0x16e   :  { %v147_v29 = vpop.xlane.xlu0 %146 }
 0x16f   :  { %v150_v30 = vmul.f32 0.03125, %v147_v29  ;;  %v153_v31 = vmul.f32 %v151_v28, %v151_v28 }
 0x171   :  { %v152_v32 = vsub.f32 %v141_v24, %v150_v30  ;;  %v155_v33 = vsel %vm28_vm0, %v153_v31, 0.0 }
 0x172   :  { %156 = vadd.xlane.f32.xlu1 %v155_v33 }
 0x173   :  { %v154_v34 = vmul.f32 %v152_v32, %v152_v32 }
 0x175   :  { %v158_v35 = vsel %vm28_vm0, %v154_v34, 0.0 }
 0x176   :  { %159 = vadd.xlane.f32.xlu1 %v158_v35 }
 0x1fb   :  { %v157_v36 = vpop.xlane.xlu1 %156 }
 0x1fc   :  { %v161_v37 = vmul.f32 0.03125, %v157_v36 }
 0x1fe   :  { %v163_v38 = vadd.f32 1e-12, %v161_v37 }
 0x1ff   :  { %v160_v39 = vpop.xlane.xlu1 %159 }
 0x200   :  { %243 = vrsqrt.f32 %v163_v38  ;;  %v162_v40 = vmul.f32 0.03125, %v160_v39 }
 0x202   :  { %v164_v41 = vadd.f32 1e-12, %v162_v40 }
 0x204   :  { %245 = vrsqrt.f32 %v164_v41 }
 0x20d   :  { %v244_v42 = vpop.eup %243 }
 0x20e   :  { %v167_v44 = vmul.f32 %v244_v42, %v151_v28 }
 0x210   :  { %v176_v46 = vmul.f32 %v209_v43, %v167_v44 }
 0x211   :  { %v246_v47 = vpop.eup %245 }
 0x212   :  { %v185_v48 = vadd.f32 %v210_v45, %v176_v46  ;;  %v168_v49 = vmul.f32 %v246_v47, %v152_v32 }
 0x214   :  { %v213_v50 = vpack.c.bf16 %v185_v48, %v185_v48  ;;  %v177_v51 = vmul.f32 %v209_v43, %v168_v49 }
 0x216   :  { %196 = vst.msk [vmem:[%s331_s6] sm:$0xf] %vm195_vm3, %v213_v50  ;;  %v186_v52 = vadd.f32 %v210_v45, %v177_v51 }
 0x218   :  { %v214_v53 = vpack.c.bf16 %v186_v52, %v186_v52 }
 0x21a   :  { %197 = vst.msk [vmem:[%s331_s6 + $0x4] sm:$0xf] %vm195_vm3, %v214_v53 }

</bundles_post_ra>
